<compile_context>
chip_gen: v7x
topology: tpu7x:2x2x1
jax: 0.10.0
libtpu: 0.0.40
codegen_flags: <defaults>
</compile_context>

<pallas_src>
import functools

import jax
import jax.numpy as jnp
from jax.experimental import pallas as pl
from jax.experimental.pallas import tpu as pltpu

C1 = 0.01 ** 2
C2 = 0.03 ** 2

# Budget the per-block working set for the tightest generation (v7x: 64 MiB
# physical VMEM, 32 MiB scoped default):
#   pipeline buffers : 3 arrays x 2 buffers x block_bytes
#   live f32 temps   : ~12-14 x block_bytes
# so cap a single block array at 256K f32 elements (1 MiB).
_MAX_BLOCK_ELEMS = 256 * 1024
_VMEM_LIMIT_BYTES = 32 * 1024 * 1024


def _pick_group(n_slabs, elems_per_slab):
    """Number of (b, c) slabs per grid step."""
    g = max(1, _MAX_BLOCK_ELEMS // max(1, elems_per_slab))
    g = min(g, n_slabs)
    # Keep at least 2 grid steps when possible so both v7x TensorCores get work.
    while g > 1 and -(-n_slabs // g) < 2:
        g -= 1
    # Use a divisor of n_slabs so there is no ragged trailing block.
    while g > 1 and n_slabs % g:
        g -= 1
    return g


def _ssim_kernel(x_ref, y_ref, o_ref, *, padded):
    G, H, W = o_ref.shape
    x = x_ref[...].astype(jnp.float32)
    y = y_ref[...].astype(jnp.float32)

    if padded:
        # Inputs carry a 1-pixel reflection halo: shape (G, H+2, W+2).
        # Separable 3x3 sum via offset slices of the padded slab.
        def pool(a):
            h = a[:, :, 0:W] + a[:, :, 1:W + 1] + a[:, :, 2:W + 2]   # (G,H+2,W)
            v = h[:, 0:H, :] + h[:, 1:H + 1, :] + h[:, 2:H + 2, :]   # (G,H,W)
            return v * (1.0 / 9.0)
    else:
        # Reflection pad fused in-kernel: neighbours via XLU rolls, boundary
        # rows/cols fixed with selects (reflect: a[-1] := a[1], a[n] := a[n-2]).
        col = jax.lax.broadcasted_iota(jnp.int32, (G, H, W), 2)
        row = jax.lax.broadcasted_iota(jnp.int32, (G, H, W), 1)
        first_c, last_c = col == 0, col == W - 1
        first_r, last_r = row == 0, row == H - 1

        def pool(a):
            # Horizontal 3-tap (lane axis).
            al = pltpu.roll(a, shift=1, axis=2)    # a[..., j-1] (wrapped)
            ar = pltpu.roll(a, shift=-1, axis=2)   # a[..., j+1] (wrapped)
            h = jnp.where(first_c, ar, al) + a + jnp.where(last_c, al, ar)
            # Vertical 3-tap (sublane axis).
            hu = pltpu.roll(h, shift=1, axis=1)    # h[..., i-1, :] (wrapped)
            hd = pltpu.roll(h, shift=-1, axis=1)   # h[..., i+1, :] (wrapped)
            v = jnp.where(first_r, hd, hu) + h + jnp.where(last_r, hu, hd)
            return v * (1.0 / 9.0)

    mu_x = pool(x)
    mu_y = pool(y)
    sigma_x = pool(x * x) - mu_x * mu_x
    sigma_y = pool(y * y) - mu_y * mu_y
    sigma_xy = pool(x * y) - mu_x * mu_y

    ssim_n = (2.0 * mu_x * mu_y + C1) * (2.0 * sigma_xy + C2)
    ssim_d = (mu_x * mu_x + mu_y * mu_y + C1) * (sigma_x + sigma_y + C2)

    # ssim_d >= C1*C2 > 0, and the result is clamped; push the reciprocal onto
    # the otherwise-idle EUP slot.
    out = (1.0 - ssim_n * pl.reciprocal(ssim_d, approx=True)) * 0.5
    o_ref[...] = jnp.clip(out, 0.0, 1.0).astype(o_ref.dtype)


def ssim(x, y):
    """x, y: NCHW float32. Returns per-pixel SSIM loss, same shape as inputs."""
    assert x.shape == y.shape and x.ndim == 4, "expected NCHW inputs"
    B, C, H, W = x.shape
    assert H >= 2 and W >= 2, "ReflectionPad2d(1) requires H, W >= 2"
    N = B * C

    # Fused (pad-free, roll-based) path only for lane-/sublane-aligned shapes;
    # otherwise fall back to the wrapper-side reflection pad.
    fused_pad = (W % 128 == 0) and (H % 8 == 0)
    G = _pick_group(N, (H + 2) * (W + 2))
    grid = (N // G,)
    kernel = functools.partial(_ssim_kernel, padded=not fused_pad)

    if fused_pad:
        xs = x.reshape(N, H, W)
        ys = y.reshape(N, H, W)
        in_block = (G, H, W)
    else:
        pad = ((0, 0), (0, 0), (1, 1), (1, 1))
        xs = jnp.pad(x, pad, mode="reflect").reshape(N, H + 2, W + 2)
        ys = jnp.pad(y, pad, mode="reflect").reshape(N, H + 2, W + 2)
        in_block = (G, H + 2, W + 2)

    out = pl.pallas_call(
        kernel,
        out_shape=jax.ShapeDtypeStruct((N, H, W), x.dtype),
        grid_spec=pltpu.PrefetchScalarGridSpec(
            num_scalar_prefetch=0,
            grid=grid,
            in_specs=[
                pl.BlockSpec(in_block, lambda i: (i, 0, 0)),
                pl.BlockSpec(in_block, lambda i: (i, 0, 0)),
            ],
            out_specs=pl.BlockSpec((G, H, W), lambda i: (i, 0, 0)),
        ),
        compiler_params=pltpu.CompilerParams(
            dimension_semantics=("parallel",),
            vmem_limit_bytes=_VMEM_LIMIT_BYTES,
        ),
    )(xs, ys)
    return out.reshape(B, C, H, W)


def _ssim_ref(x, y):
    """Pure-JAX reference matching the PyTorch module (for validation)."""
    pad = ((0, 0), (0, 0), (1, 1), (1, 1))
    xp = jnp.pad(x, pad, mode="reflect")
    yp = jnp.pad(y, pad, mode="reflect")

    def pool(a):
        B, C, Hp, Wp = a.shape
        H, W = Hp - 2, Wp - 2
        acc = jnp.zeros((B, C, H, W), jnp.float32)
        for dy in range(3):
            for dx in range(3):
                acc = acc + a[:, :, dy:dy + H, dx:dx + W]
        return acc / 9.0

    mu_x, mu_y = pool(xp), pool(yp)
    sigma_x = pool(xp * xp) - mu_x * mu_x
    sigma_y = pool(yp * yp) - mu_y * mu_y
    sigma_xy = pool(xp * yp) - mu_x * mu_y
    n = (2 * mu_x * mu_y + C1) * (2 * sigma_xy + C2)
    d = (mu_x ** 2 + mu_y ** 2 + C1) * (sigma_x + sigma_y + C2)
    return jnp.clip((1 - n / d) / 2, 0.0, 1.0)


if __name__ == "__main__":
    key = jax.random.PRNGKey(0)
    kx, ky = jax.random.split(key)
    B, C, H, W = 2, 4, 16, 16
    x = jax.random.uniform(kx, (B, C, H, W), dtype=jnp.float32)
    y = jax.random.uniform(ky, (B, C, H, W), dtype=jnp.float32)

    out = jax.block_until_ready(ssim(x, y))
    ref = _ssim_ref(x, y)
    assert out.shape == (B, C, H, W)
    # approx=True reciprocal (EUP) carries ~2^-12 relative error; allow 2e-3.
    err = float(jnp.max(jnp.abs(out - ref)))
    assert err < 2e-3, f"max abs err {err}"
    print("KERNEL_OK")
</pallas_src>

<mosaic_0001>
module attributes {stable_mosaic.version = 11 : i64} {
  func.func @_ssim_kernel(%arg0: i32, %arg1: memref<4x18x18xf32, #tpu.memory_space<vmem>>, %arg2: memref<4x18x18xf32, #tpu.memory_space<vmem>>, %arg3: memref<4x16x16xf32, #tpu.memory_space<vmem>>) attributes {dimension_semantics = [#tpu.dimension_semantics<parallel>], iteration_bounds = array<i64: 2>, scalar_prefetch = 0 : i64, scratch_operands = 0 : i64, tpu.core_type = #tpu.core_type<tc>, window_params = [{transform_indices = @transform_0, window_bounds = array<i64: 4, 18, 18>}, {transform_indices = @transform_1, window_bounds = array<i64: 4, 18, 18>}, {transform_indices = @transform_2, window_bounds = array<i64: 4, 16, 16>}]} {
    %c0 = arith.constant 0 : index
    %c0_0 = arith.constant 0 : index
    %c0_1 = arith.constant 0 : index
    %0 = vector.load %arg1[%c0, %c0_0, %c0_1] : memref<4x18x18xf32, #tpu.memory_space<vmem>>, vector<4x18x18xf32>
    %c0_2 = arith.constant 0 : index
    %c0_3 = arith.constant 0 : index
    %c0_4 = arith.constant 0 : index
    %1 = vector.load %arg2[%c0_2, %c0_3, %c0_4] : memref<4x18x18xf32, #tpu.memory_space<vmem>>, vector<4x18x18xf32>
    %2 = vector.extract_strided_slice %0 {offsets = [0, 0, 0], sizes = [4, 18, 16], strides = [1, 1, 1]} : vector<4x18x18xf32> to vector<4x18x16xf32>
    %3 = vector.extract_strided_slice %0 {offsets = [0, 0, 1], sizes = [4, 18, 16], strides = [1, 1, 1]} : vector<4x18x18xf32> to vector<4x18x16xf32>
    %4 = arith.addf %2, %3 : vector<4x18x16xf32>
    %5 = vector.extract_strided_slice %0 {offsets = [0, 0, 2], sizes = [4, 18, 16], strides = [1, 1, 1]} : vector<4x18x18xf32> to vector<4x18x16xf32>
    %6 = arith.addf %4, %5 : vector<4x18x16xf32>
    %7 = vector.extract_strided_slice %6 {offsets = [0, 0, 0], sizes = [4, 16, 16], strides = [1, 1, 1]} : vector<4x18x16xf32> to vector<4x16x16xf32>
    %8 = vector.extract_strided_slice %6 {offsets = [0, 1, 0], sizes = [4, 16, 16], strides = [1, 1, 1]} : vector<4x18x16xf32> to vector<4x16x16xf32>
    %9 = arith.addf %7, %8 : vector<4x16x16xf32>
    %10 = vector.extract_strided_slice %6 {offsets = [0, 2, 0], sizes = [4, 16, 16], strides = [1, 1, 1]} : vector<4x18x16xf32> to vector<4x16x16xf32>
    %11 = arith.addf %9, %10 : vector<4x16x16xf32>
    %cst = arith.constant 0.111111112 : f32
    %12 = vector.broadcast %cst : f32 to vector<4x16x16xf32>
    %13 = arith.mulf %11, %12 : vector<4x16x16xf32>
    %14 = vector.extract_strided_slice %1 {offsets = [0, 0, 0], sizes = [4, 18, 16], strides = [1, 1, 1]} : vector<4x18x18xf32> to vector<4x18x16xf32>
    %15 = vector.extract_strided_slice %1 {offsets = [0, 0, 1], sizes = [4, 18, 16], strides = [1, 1, 1]} : vector<4x18x18xf32> to vector<4x18x16xf32>
    %16 = arith.addf %14, %15 : vector<4x18x16xf32>
    %17 = vector.extract_strided_slice %1 {offsets = [0, 0, 2], sizes = [4, 18, 16], strides = [1, 1, 1]} : vector<4x18x18xf32> to vector<4x18x16xf32>
    %18 = arith.addf %16, %17 : vector<4x18x16xf32>
    %19 = vector.extract_strided_slice %18 {offsets = [0, 0, 0], sizes = [4, 16, 16], strides = [1, 1, 1]} : vector<4x18x16xf32> to vector<4x16x16xf32>
    %20 = vector.extract_strided_slice %18 {offsets = [0, 1, 0], sizes = [4, 16, 16], strides = [1, 1, 1]} : vector<4x18x16xf32> to vector<4x16x16xf32>
    %21 = arith.addf %19, %20 : vector<4x16x16xf32>
    %22 = vector.extract_strided_slice %18 {offsets = [0, 2, 0], sizes = [4, 16, 16], strides = [1, 1, 1]} : vector<4x18x16xf32> to vector<4x16x16xf32>
    %23 = arith.addf %21, %22 : vector<4x16x16xf32>
    %cst_5 = arith.constant 0.111111112 : f32
    %24 = vector.broadcast %cst_5 : f32 to vector<4x16x16xf32>
    %25 = arith.mulf %23, %24 : vector<4x16x16xf32>
    %26 = arith.mulf %0, %0 : vector<4x18x18xf32>
    %27 = vector.extract_strided_slice %26 {offsets = [0, 0, 0], sizes = [4, 18, 16], strides = [1, 1, 1]} : vector<4x18x18xf32> to vector<4x18x16xf32>
    %28 = vector.extract_strided_slice %26 {offsets = [0, 0, 1], sizes = [4, 18, 16], strides = [1, 1, 1]} : vector<4x18x18xf32> to vector<4x18x16xf32>
    %29 = arith.addf %27, %28 : vector<4x18x16xf32>
    %30 = vector.extract_strided_slice %26 {offsets = [0, 0, 2], sizes = [4, 18, 16], strides = [1, 1, 1]} : vector<4x18x18xf32> to vector<4x18x16xf32>
    %31 = arith.addf %29, %30 : vector<4x18x16xf32>
    %32 = vector.extract_strided_slice %31 {offsets = [0, 0, 0], sizes = [4, 16, 16], strides = [1, 1, 1]} : vector<4x18x16xf32> to vector<4x16x16xf32>
    %33 = vector.extract_strided_slice %31 {offsets = [0, 1, 0], sizes = [4, 16, 16], strides = [1, 1, 1]} : vector<4x18x16xf32> to vector<4x16x16xf32>
    %34 = arith.addf %32, %33 : vector<4x16x16xf32>
    %35 = vector.extract_strided_slice %31 {offsets = [0, 2, 0], sizes = [4, 16, 16], strides = [1, 1, 1]} : vector<4x18x16xf32> to vector<4x16x16xf32>
    %36 = arith.addf %34, %35 : vector<4x16x16xf32>
    %cst_6 = arith.constant 0.111111112 : f32
    %37 = vector.broadcast %cst_6 : f32 to vector<4x16x16xf32>
    %38 = arith.mulf %36, %37 : vector<4x16x16xf32>
    %39 = arith.mulf %13, %13 : vector<4x16x16xf32>
    %40 = arith.subf %38, %39 : vector<4x16x16xf32>
    %41 = arith.mulf %1, %1 : vector<4x18x18xf32>
    %42 = vector.extract_strided_slice %41 {offsets = [0, 0, 0], sizes = [4, 18, 16], strides = [1, 1, 1]} : vector<4x18x18xf32> to vector<4x18x16xf32>
    %43 = vector.extract_strided_slice %41 {offsets = [0, 0, 1], sizes = [4, 18, 16], strides = [1, 1, 1]} : vector<4x18x18xf32> to vector<4x18x16xf32>
    %44 = arith.addf %42, %43 : vector<4x18x16xf32>
    %45 = vector.extract_strided_slice %41 {offsets = [0, 0, 2], sizes = [4, 18, 16], strides = [1, 1, 1]} : vector<4x18x18xf32> to vector<4x18x16xf32>
    %46 = arith.addf %44, %45 : vector<4x18x16xf32>
    %47 = vector.extract_strided_slice %46 {offsets = [0, 0, 0], sizes = [4, 16, 16], strides = [1, 1, 1]} : vector<4x18x16xf32> to vector<4x16x16xf32>
    %48 = vector.extract_strided_slice %46 {offsets = [0, 1, 0], sizes = [4, 16, 16], strides = [1, 1, 1]} : vector<4x18x16xf32> to vector<4x16x16xf32>
    %49 = arith.addf %47, %48 : vector<4x16x16xf32>
    %50 = vector.extract_strided_slice %46 {offsets = [0, 2, 0], sizes = [4, 16, 16], strides = [1, 1, 1]} : vector<4x18x16xf32> to vector<4x16x16xf32>
    %51 = arith.addf %49, %50 : vector<4x16x16xf32>
    %cst_7 = arith.constant 0.111111112 : f32
    %52 = vector.broadcast %cst_7 : f32 to vector<4x16x16xf32>
    %53 = arith.mulf %51, %52 : vector<4x16x16xf32>
    %54 = arith.mulf %25, %25 : vector<4x16x16xf32>
    %55 = arith.subf %53, %54 : vector<4x16x16xf32>
    %56 = arith.mulf %0, %1 : vector<4x18x18xf32>
    %57 = vector.extract_strided_slice %56 {offsets = [0, 0, 0], sizes = [4, 18, 16], strides = [1, 1, 1]} : vector<4x18x18xf32> to vector<4x18x16xf32>
    %58 = vector.extract_strided_slice %56 {offsets = [0, 0, 1], sizes = [4, 18, 16], strides = [1, 1, 1]} : vector<4x18x18xf32> to vector<4x18x16xf32>
    %59 = arith.addf %57, %58 : vector<4x18x16xf32>
    %60 = vector.extract_strided_slice %56 {offsets = [0, 0, 2], sizes = [4, 18, 16], strides = [1, 1, 1]} : vector<4x18x18xf32> to vector<4x18x16xf32>
    %61 = arith.addf %59, %60 : vector<4x18x16xf32>
    %62 = vector.extract_strided_slice %61 {offsets = [0, 0, 0], sizes = [4, 16, 16], strides = [1, 1, 1]} : vector<4x18x16xf32> to vector<4x16x16xf32>
    %63 = vector.extract_strided_slice %61 {offsets = [0, 1, 0], sizes = [4, 16, 16], strides = [1, 1, 1]} : vector<4x18x16xf32> to vector<4x16x16xf32>
    %64 = arith.addf %62, %63 : vector<4x16x16xf32>
    %65 = vector.extract_strided_slice %61 {offsets = [0, 2, 0], sizes = [4, 16, 16], strides = [1, 1, 1]} : vector<4x18x16xf32> to vector<4x16x16xf32>
    %66 = arith.addf %64, %65 : vector<4x16x16xf32>
    %cst_8 = arith.constant 0.111111112 : f32
    %67 = vector.broadcast %cst_8 : f32 to vector<4x16x16xf32>
    %68 = arith.mulf %66, %67 : vector<4x16x16xf32>
    %69 = arith.mulf %13, %25 : vector<4x16x16xf32>
    %70 = arith.subf %68, %69 : vector<4x16x16xf32>
    %cst_9 = arith.constant 2.000000e+00 : f32
    %71 = vector.broadcast %cst_9 : f32 to vector<4x16x16xf32>
    %72 = arith.mulf %71, %13 : vector<4x16x16xf32>
    %73 = arith.mulf %72, %25 : vector<4x16x16xf32>
    %cst_10 = arith.constant 9.99999974E-5 : f32
    %74 = vector.broadcast %cst_10 : f32 to vector<4x16x16xf32>
    %75 = arith.addf %73, %74 : vector<4x16x16xf32>
    %cst_11 = arith.constant 2.000000e+00 : f32
    %76 = vector.broadcast %cst_11 : f32 to vector<4x16x16xf32>
    %77 = arith.mulf %76, %70 : vector<4x16x16xf32>
    %cst_12 = arith.constant 8.99999984E-4 : f32
    %78 = vector.broadcast %cst_12 : f32 to vector<4x16x16xf32>
    %79 = arith.addf %77, %78 : vector<4x16x16xf32>
    %80 = arith.mulf %75, %79 : vector<4x16x16xf32>
    %81 = arith.mulf %13, %13 : vector<4x16x16xf32>
    %82 = arith.mulf %25, %25 : vector<4x16x16xf32>
    %83 = arith.addf %81, %82 : vector<4x16x16xf32>
    %cst_13 = arith.constant 9.99999974E-5 : f32
    %84 = vector.broadcast %cst_13 : f32 to vector<4x16x16xf32>
    %85 = arith.addf %83, %84 : vector<4x16x16xf32>
    %86 = arith.addf %40, %55 : vector<4x16x16xf32>
    %cst_14 = arith.constant 8.99999984E-4 : f32
    %87 = vector.broadcast %cst_14 : f32 to vector<4x16x16xf32>
    %88 = arith.addf %86, %87 : vector<4x16x16xf32>
    %89 = arith.mulf %85, %88 : vector<4x16x16xf32>
    %90 = tpu.reciprocal %89 {approx = true} : vector<4x16x16xf32> -> vector<4x16x16xf32>
    %91 = arith.mulf %80, %90 : vector<4x16x16xf32>
    %cst_15 = arith.constant 1.000000e+00 : f32
    %92 = vector.broadcast %cst_15 : f32 to vector<4x16x16xf32>
    %93 = arith.subf %92, %91 : vector<4x16x16xf32>
    %cst_16 = arith.constant 5.000000e-01 : f32
    %94 = vector.broadcast %cst_16 : f32 to vector<4x16x16xf32>
    %95 = arith.mulf %93, %94 : vector<4x16x16xf32>
    %cst_17 = arith.constant 0.000000e+00 : f32
    %cst_18 = arith.constant 1.000000e+00 : f32
    %96 = vector.broadcast %cst_17 : f32 to vector<4x16x16xf32>
    %97 = arith.maximumf %96, %95 : vector<4x16x16xf32>
    %98 = vector.broadcast %cst_18 : f32 to vector<4x16x16xf32>
    %99 = arith.minimumf %98, %97 : vector<4x16x16xf32>
    %c0_19 = arith.constant 0 : index
    %c0_20 = arith.constant 0 : index
    %c0_21 = arith.constant 0 : index
    %100 = vector.load %arg3[%c0_19, %c0_20, %c0_21] : memref<4x16x16xf32, #tpu.memory_space<vmem>>, vector<4x16x16xf32>
    tpu.vector_store %arg3[%c0_19, %c0_20, %c0_21], %99 {strides = array<i32>} : memref<4x16x16xf32, #tpu.memory_space<vmem>>, vector<4x16x16xf32>,
    return
  }
  func.func @transform_0(%arg0: i32) -> (i32, i32, i32) {
    %c0_i32 = arith.constant 0 : i32
    %c0_i32_0 = arith.constant 0 : i32
    %c0_i32_1 = arith.constant 0 : i32
    return %arg0, %c0_i32, %c0_i32_0 : i32, i32, i32
  }
  func.func @transform_1(%arg0: i32) -> (i32, i32, i32) {
    %c0_i32 = arith.constant 0 : i32
    %c0_i32_0 = arith.constant 0 : i32
    %c0_i32_1 = arith.constant 0 : i32
    return %arg0, %c0_i32, %c0_i32_0 : i32, i32, i32
  }
  func.func @transform_2(%arg0: i32) -> (i32, i32, i32) {
    %c0_i32 = arith.constant 0 : i32
    %c0_i32_0 = arith.constant 0 : i32
    %c0_i32_1 = arith.constant 0 : i32
    return %arg0, %c0_i32, %c0_i32_0 : i32, i32, i32
  }
}

</mosaic_0001>

<bundles_post_ra>
// kernel: tpu_custom_call.1
= control target key start
LH: loop header
LB: loop body
LE: loop exit
PB: predicated region body
PF: predicated region fallthrough
CT: control target
= control target key end

     0   :  { %7 = vsyncpa [#allocation3], 0  ;;  %s2910_s0 = inlined_call_operand.vmem [shape: f32[8,18,18], index: 0, kind: input, shape index: {}]   ;;  %s2911_s1 = inlined_call_operand.vmem [shape: f32[8,18,18], index: 1, kind: input, shape index: {}]   ;;  %s2912_s2 = inlined_call_operand.hbm [shape: f32[8,16,16], index: 2, kind: output, shape index: {}]  }
   0x1   :  { %9 = vsyncpa [#allocation3 + $0x1], 0  ;;  %s1678_s9 = smov 0   ;;  %s1680_s10 = smov 0  }
   0x2   :  { %s1682_s11 = smov 0   ;;  %s1684_s12 = smov 0  }
   0x3 LB: > { %s1699_s13 = sadd.s32 4294967295, %s1656_s12   ;;  %s1517_s14 = sadd.s32 4294967294, %s1656_s12   ;;  %s1656_s12 = sphi %s1684_s12, %s3107_s12   ;;  %s1652_s11 = sphi %s1682_s11, %s3106_s11   ;;  %s1648_s10 = sphi %s1680_s10, %s3105_s10   ;;  %s1644_s9 = sphi %s1678_s9, %s3104_s9  }
   0x4   : > { %s1703_s15 = sadd.s32 1, %s1656_s12   ;;  %s74_s16 = sadd.s32 1, %s1652_s11 }
   0x5   : > { %s71_s17 = ssub.s32 %s1656_s12, %s1703_s15  ;;  %p84_p0 = scmp.ne.s32.totalorder %s1652_s11, %s1648_s10 }
   0x6   : > { %p72_p1 = scmp.eq.s32.totalorder %s71_s17, 0  ;;  %p85_p2 = scmp.eq.s32.totalorder %s1699_s13, 1 }
   0x7   : > { %p90_p3 = scmp.ne.s32.totalorder %s1648_s10, %s1644_s9  ;;  %p91_p4 = scmp.eq.s32.totalorder %s1517_s14, 1 }
   0x8   : > { %s1714_s18 = scalar_select %p72_p1, %s1652_s11, %s74_s16  }
   0x9   : > { %p1716_p5 = por %p85_p2, %p84_p0  ;;  %p1720_p6 = por %p91_p4, %p90_p3 }
   0xa   : > { %p1520_p7 = scmp.ge.s32.totalorder %s1656_s12, 1  ;;  %p129_p8 = scmp.lt.s32.totalorder %s1656_s12, 3 }
   0xc   : > { %p130_p9 = pnand %p1520_p7, %p129_p8 }
   0xe   : > { %133 = sbr.rel (%p130_p9) target bundleno = 430 (0x1ae), region = 28 }
  0x15   : > { %s1522_s21 = sshll.u32 %s1699_s13, 2  ;;  %s1658_s26 = smov 127   ;;  %vm317_vm0 = vcmask 1046528   ;;  %vm354_vm1 = vcmask 1045504   ;;  %vm1419_vm2 = vcmask 130048  }
  0x16   : > { %p159_p10 = scmp.lt.s32.totalorder %s1522_s21, 7  ;;  %s1659_s27 = smov 126  }
  0x17   : > { %s155_s3 = sand.u32 1, %s1648_s10   ;;  %s1533_s6 = sshll.u32 %s1699_s13, 10 }
  0x18   : > { %s3109_s21 = smov (!%p159_p10, %s1522_s21), 7  ;;  %s1521_s4 = sshll.u32 %s155_s3, 6 }
  0x19   : > { %s1534_s22 = smul.u32 24, %s3109_s21  ;;  %s2826_s5 = scalar_lea.vmem [#allocation2], %s1521_s4 }
  0x1a   : > { %s1443_s7 = sshll.u32 %s2826_s5, 4  ;;  %s2859_s16 = scalar_lea.hbm %s2912_s2, %s1533_s6  ;;  %s2861_s7 = int_to_ptr.vmem [resolvable:$true] %s1443_s7 }
  0x1b   : > { %s163_s25 = scalar_lea.vmem %s2910_s0, %s1534_s22  ;;  %s170_s30 = scalar_lea.vmem %s2911_s1, %s1534_s22 }
  0x1c   : > { %v1735_v0 = vld [vmem:[%s163_s25 + $0x10] sm:$0x3]  ;;  %v1737_v1 = vld [vmem:[%s163_s25] sm:$0xff]  ;;  %v1743_v2 = vld [vmem:[%s163_s25 + $0x18] sm:$0xff]  ;;  %s2869_s13 = scalar_lea.sflag [#allocation3], %s155_s3  ;;  %s1594_s17 = scalar_lea.vmem %s2861_s7, 1024 }
  0x1d   : > { %213 = vrot.lane.b32.xlu1 %v1735_v0, %s1658_s26  ;;  %209 = vrot.lane.b32.xlu0 %v1737_v1, %s1658_s26  ;;  %v1745_v3 = vld [vmem:[%s163_s25 + $0x8] sm:$0xff]  ;;  %v1753_v5 = vld [vmem:[%s163_s25 + $0x20] sm:$0xff]  ;;  %v1890_v25 = vmul.f32 %v1737_v1, %v1737_v1  ;;  %v1898_v26 = vmul.f32 %v1743_v2, %v1743_v2  ;;  %v1902_v27 = vmul.f32 %v1735_v0, %v1735_v0  ;;  %p1595_p11 = scmp.ne.s32.totalorder %s2861_s7, %s1594_s17  ;;  %s1660_s21 = smov [#allocation2]  }
  0x1e   : > { %v1751_v4 = vld [vmem:[%s163_s25 + $0x28] sm:$0x3]  ;;  %2971 = vst [vmem:[#allocation5_spill] sm:$0xff] %v1753_v5  ;;  %v1759_v6 = vld [vmem:[%s163_s25 + $0x38] sm:$0xff]  ;;  %v1761_v7 = vld [vmem:[%s163_s25 + $0x30] sm:$0xff]  ;;  %v1886_v24 = vmul.f32 %v1745_v3, %v1745_v3  ;;  %v1914_v29 = vmul.f32 %v1753_v5, %v1753_v5  ;;  %s1598_s22 = sshll.u32 %s1660_s21, 4  ;;  %s1599_s22 = int_to_ptr.vmem [resolvable:$false] %s1598_s22 }
  0x1f   : > { %2972 = vst [vmem:[#allocation6_spill] sm:$0xff] %v1759_v6  ;;  %v1767_v8 = vld [vmem:[%s163_s25 + $0x48] sm:$0xff]  ;;  %v1769_v9 = vld [vmem:[%s163_s25 + $0x40] sm:$0x3]  ;;  %v1775_v10 = vld [vmem:[%s163_s25 + $0x58] sm:$0x3]  ;;  %v1910_v28 = vmul.f32 %v1751_v4, %v1751_v4  ;;  %v1922_v30 = vmul.f32 %v1759_v6, %v1759_v6  ;;  %v1926_v31 = vmul.f32 %v1761_v7, %v1761_v7  ;;  %p1596_p12 = pnand %p1595_p11, %p1716_p5  ;;  %p1601_p0 = scmp.lt.s32.totalorder %s2861_s7, %s1599_s22 }
  0x20   : > { %v1777_v11 = vld [vmem:[%s163_s25 + $0x50] sm:$0xff]  ;;  %v1812_v12 = vld [vmem:[%s170_s30 + $0x8] sm:$0xff]  ;;  %v1814_v13 = vld [vmem:[%s170_s30] sm:$0xff]  ;;  %2974 = vst [vmem:[#allocation8_spill] sm:$0xff] %v1914_v29  ;;  %v1934_v32 = vmul.f32 %v1767_v8, %v1767_v8  ;;  %v1938_v33 = vmul.f32 %v1769_v9, %v1769_v9  ;;  %v1946_v34 = vmul.f32 %v1775_v10, %v1775_v10  ;;  %s1600_s23 = scalar_lea.vmem %s1599_s22, 2048 }
  0x21   : > { %215 = vrot.lane.b32.xlu1 %v1743_v2, %s1658_s26  ;;  %211 = vrot.lane.b32.xlu0 %v1745_v3, %s1658_s26  ;;  %v1820_v14 = vld [vmem:[%s170_s30 + $0x18] sm:$0xff]  ;;  %v1822_v15 = vld [vmem:[%s170_s30 + $0x10] sm:$0x3]  ;;  %2973 = vst [vmem:[#allocation7_spill] sm:$0xff] %v1910_v28  ;;  %2975 = vst [vmem:[#allocation9_spill] sm:$0xff] %v1922_v30  ;;  %v1950_v35 = vmul.f32 %v1777_v11, %v1777_v11  ;;  %v1998_v48 = vmul.f32 %v1812_v12, %v1812_v12  ;;  %p1597_p13 = pneg %p1596_p12  ;;  %p1602_p1 = scmp.lt.s32.totalorder %s1600_s23, %s1594_s17 }
  0x22   : > { %v1828_v16 = vld [vmem:[%s170_s30 + $0x28] sm:$0x3]  ;;  %v1830_v17 = vld [vmem:[%s170_s30 + $0x20] sm:$0xff]  ;;  %v1836_v18 = vld [vmem:[%s170_s30 + $0x38] sm:$0xff]  ;;  %2976 = vst [vmem:[#allocation10_spill] sm:$0xff] %v1926_v31  ;;  %v2002_v49 = vmul.f32 %v1814_v13, %v1814_v13  ;;  %v2014_v52 = vmul.f32 %v1820_v14, %v1820_v14  ;;  %v2018_v53 = vmul.f32 %v1822_v15, %v1822_v15 }
  0x23   : > { %v1838_v19 = vld [vmem:[%s170_s30 + $0x30] sm:$0xff]  ;;  %v1844_v20 = vld [vmem:[%s170_s30 + $0x48] sm:$0xff]  ;;  %v1846_v21 = vld [vmem:[%s170_s30 + $0x40] sm:$0x3]  ;;  %2977 = vst [vmem:[#allocation11_spill] sm:$0xff] %v1934_v32  ;;  %v2030_v56 = vmul.f32 %v1828_v16, %v1828_v16  ;;  %v2034_v57 = vmul.f32 %v1830_v17, %v1830_v17  ;;  %v2046_v60 = vmul.f32 %v1836_v18, %v1836_v18  ;;  %p1603_p2 = por %p1602_p1, %p1601_p0 }
  0x24   : > { %v1852_v22 = vld [vmem:[%s170_s30 + $0x58] sm:$0x3]  ;;  %v1854_v23 = vld [vmem:[%s170_s30 + $0x50] sm:$0xff]  ;;  %2978 = vst [vmem:[#allocation12_spill] sm:$0xff] %v1938_v33  ;;  %2979 = vst [vmem:[#allocation13_spill] sm:$0xff] %v1946_v34  ;;  %v2050_v61 = vmul.f32 %v1838_v19, %v1838_v19 }
  0x25   : > { %219 = vrot.lane.b32.xlu1 %v1751_v4, %s1658_s26  ;;  %217 = vrot.lane.b32.xlu0 %v1753_v5, %s1658_s26  ;;  %2980 = vst [vmem:[#allocation14_spill] sm:$0xff] %v1950_v35  ;;  %2985 = vst [vmem:[#allocation19_spill] sm:$0xff] %v1998_v48  ;;  %p1604_p3 = pnand %p1603_p2, %p1597_p13 }
  0x26   : > { %2986 = vst [vmem:[#allocation20_spill] sm:$0xff] %v2002_v49  ;;  %2989 = vst [vmem:[#allocation23_spill] sm:$0xff] %v2014_v52 }
  0x27   : > { %2990 = vst [vmem:[#allocation24_spill] sm:$0xff] %v2018_v53  ;;  %2993 = vst [vmem:[#allocation27_spill] sm:$0xff] %v2030_v56 }
  0x28   : > { %2994 = vst [vmem:[#allocation28_spill] sm:$0xff] %v2034_v57  ;;  %2997 = vst [vmem:[#allocation31_spill] sm:$0xff] %v2046_v60 }
  0x29   : > { %223 = vrot.lane.b32.xlu1 %v1759_v6, %s1658_s26  ;;  %221 = vrot.lane.b32.xlu0 %v1761_v7, %s1658_s26  ;;  %2998 = vst [vmem:[#allocation32_spill] sm:$0xff] %v2050_v61 }
  0x2d   : > { %227 = vrot.lane.b32.xlu1 %v1767_v8, %s1658_s26  ;;  %225 = vrot.lane.b32.xlu0 %v1769_v9, %s1658_s26 }
  0x31   : > { %231 = vrot.lane.b32.xlu1 %v1775_v10, %s1658_s26  ;;  %229 = vrot.lane.b32.xlu0 %v1777_v11, %s1658_s26 }
  0x35   : > { %259 = vrot.lane.b32.xlu1 %v1745_v3, %s1659_s27  ;;  %257 = vrot.lane.b32.xlu0 %v1737_v1, %s1659_s27 }
  0x39   : > { %263 = vrot.lane.b32.xlu1 %v1743_v2, %s1659_s27  ;;  %261 = vrot.lane.b32.xlu0 %v1735_v0, %s1659_s27 }
  0x3d   : > { %267 = vrot.lane.b32.xlu1 %v1751_v4, %s1659_s27  ;;  %265 = vrot.lane.b32.xlu0 %v1753_v5, %s1659_s27 }
  0x41   : > { %271 = vrot.lane.b32.xlu1 %v1759_v6, %s1659_s27  ;;  %269 = vrot.lane.b32.xlu0 %v1761_v7, %s1659_s27 }
  0x45   : > { %275 = vrot.lane.b32.xlu1 %v1767_v8, %s1659_s27  ;;  %273 = vrot.lane.b32.xlu0 %v1769_v9, %s1659_s27 }
  0x49   : > { %279 = vrot.lane.b32.xlu1 %v1775_v10, %s1659_s27  ;;  %277 = vrot.lane.b32.xlu0 %v1777_v11, %s1659_s27 }
  0x4d   : > { %413 = vrot.lane.b32.xlu1 %v1812_v12, %s1658_s26  ;;  %411 = vrot.lane.b32.xlu0 %v1814_v13, %s1658_s26 }
  0x51   : > { %417 = vrot.lane.b32.xlu1 %v1820_v14, %s1658_s26  ;;  %415 = vrot.lane.b32.xlu0 %v1822_v15, %s1658_s26 }
  0x55   : > { %421 = vrot.lane.b32.xlu1 %v1828_v16, %s1658_s26  ;;  %419 = vrot.lane.b32.xlu0 %v1830_v17, %s1658_s26 }
  0x59   : > { %425 = vrot.lane.b32.xlu1 %v1836_v18, %s1658_s26  ;;  %423 = vrot.lane.b32.xlu0 %v1838_v19, %s1658_s26 }
  0x5d   : > { %429 = vrot.lane.b32.xlu1 %v1844_v20, %s1658_s26  ;;  %427 = vrot.lane.b32.xlu0 %v1846_v21, %s1658_s26 }
  0x61   : > { %433 = vrot.lane.b32.xlu1 %v1852_v22, %s1658_s26  ;;  %431 = vrot.lane.b32.xlu0 %v1854_v23, %s1658_s26 }
  0x65   : > { %461 = vrot.lane.b32.xlu1 %v1812_v12, %s1659_s27  ;;  %459 = vrot.lane.b32.xlu0 %v1814_v13, %s1659_s27 }
  0x69   : > { %465 = vrot.lane.b32.xlu1 %v1820_v14, %s1659_s27  ;;  %463 = vrot.lane.b32.xlu0 %v1822_v15, %s1659_s27 }
  0x6d   : > { %469 = vrot.lane.b32.xlu1 %v1828_v16, %s1659_s27  ;;  %467 = vrot.lane.b32.xlu0 %v1830_v17, %s1659_s27 }
  0x71   : > { %473 = vrot.lane.b32.xlu1 %v1836_v18, %s1659_s27  ;;  %471 = vrot.lane.b32.xlu0 %v1838_v19, %s1659_s27 }
  0x75   : > { %477 = vrot.lane.b32.xlu1 %v1844_v20, %s1659_s27  ;;  %475 = vrot.lane.b32.xlu0 %v1846_v21, %s1659_s27 }
  0x79   : > { %481 = vrot.lane.b32.xlu1 %v1852_v22, %s1659_s27  ;;  %479 = vrot.lane.b32.xlu0 %v1854_v23, %s1659_s27 }
  0x7d   : > { %625 = vrot.lane.b32.xlu1 %v1886_v24, %s1658_s26  ;;  %623 = vrot.lane.b32.xlu0 %v1890_v25, %s1658_s26 }
  0x81   : > { %629 = vrot.lane.b32.xlu1 %v1898_v26, %s1658_s26  ;;  %627 = vrot.lane.b32.xlu0 %v1902_v27, %s1658_s26 }
  0x85   : > { %633 = vrot.lane.b32.xlu1 %v1910_v28, %s1658_s26  ;;  %631 = vrot.lane.b32.xlu0 %v1914_v29, %s1658_s26 }
  0x89   : > { %637 = vrot.lane.b32.xlu1 %v1922_v30, %s1658_s26  ;;  %635 = vrot.lane.b32.xlu0 %v1926_v31, %s1658_s26 }
  0x8d   : > { %641 = vrot.lane.b32.xlu1 %v1934_v32, %s1658_s26  ;;  %639 = vrot.lane.b32.xlu0 %v1938_v33, %s1658_s26 }
  0x8f   : > { %v1952_v36 = vpop.permute.xlu1 %213  ;;  %v1954_v37 = vpop.permute.xlu0 %209 }
  0x91   : > { %645 = vrot.lane.b32.xlu1 %v1946_v34, %s1658_s26  ;;  %643 = vrot.lane.b32.xlu0 %v1950_v35, %s1658_s26 }
  0x93   : > { %v1960_v38 = vpop.permute.xlu1 %215  ;;  %v1962_v39 = vpop.permute.xlu0 %211 }
  0x95   : > { %673 = vrot.lane.b32.xlu1 %v1886_v24, %s1659_s27  ;;  %671 = vrot.lane.b32.xlu0 %v1890_v25, %s1659_s27 }
  0x97   : > { %v1968_v40 = vpop.permute.xlu1 %219  ;;  %v1970_v41 = vpop.permute.xlu0 %217 }
  0x98   : > { %2981 = vst [vmem:[#allocation15_spill] sm:$0xff] %v1970_v41 }
  0x99   : > { %677 = vrot.lane.b32.xlu1 %v1898_v26, %s1659_s27  ;;  %675 = vrot.lane.b32.xlu0 %v1902_v27, %s1659_s27 }
  0x9b   : > { %v1976_v42 = vpop.permute.xlu1 %223  ;;  %v1978_v43 = vpop.permute.xlu0 %221 }
  0x9c   : > { %2982 = vst [vmem:[#allocation16_spill] sm:$0xff] %v1976_v42  ;;  %2983 = vst [vmem:[#allocation17_spill] sm:$0xff] %v1978_v43 }
  0x9d   : > { %681 = vrot.lane.b32.xlu1 %v1910_v28, %s1659_s27  ;;  %679 = vrot.lane.b32.xlu0 %v1914_v29, %s1659_s27 }
  0x9f   : > { %v1984_v44 = vpop.permute.xlu1 %227  ;;  %v1986_v45 = vpop.permute.xlu0 %225 }
  0xa0   : > { %2984 = vst [vmem:[#allocation18_spill] sm:$0xff] %v1986_v45 }
  0xa1   : > { %685 = vrot.lane.b32.xlu1 %v1922_v30, %s1659_s27  ;;  %683 = vrot.lane.b32.xlu0 %v1926_v31, %s1659_s27 }
  0xa3   : > { %v232_v46 = vpop.permute.xlu1 %231  ;;  %v230_v47 = vpop.permute.xlu0 %229 }
  0xa5   : > { %689 = vrot.lane.b32.xlu1 %v1934_v32, %s1659_s27  ;;  %687 = vrot.lane.b32.xlu0 %v1938_v33, %s1659_s27  ;;  %v256_v32 = vadd.f32 %v232_v46, %v1775_v10 }
  0xa7   : > { %v2004_v50 = vpop.permute.xlu1 %259  ;;  %v2006_v51 = vpop.permute.xlu0 %257 }
  0xa8   : > { %2987 = vst [vmem:[#allocation21_spill] sm:$0xff] %v2004_v50  ;;  %2988 = vst [vmem:[#allocation22_spill] sm:$0xff] %v2006_v51 }
  0xa9   : > { %853 = vrot.lane.b32.xlu1 %v1998_v48, %s1658_s26  ;;  %851 = vrot.lane.b32.xlu0 %v2002_v49, %s1658_s26 }
  0xab   : > { %v2020_v54 = vpop.permute.xlu1 %263  ;;  %v2022_v55 = vpop.permute.xlu0 %261 }
  0xac   : > { %2991 = vst [vmem:[#allocation25_spill] sm:$0xff] %v2020_v54  ;;  %2992 = vst [vmem:[#allocation26_spill] sm:$0xff] %v2022_v55  ;;  %v2066_v54 = vmul.f32 %v1846_v21, %v1846_v21 }
  0xad   : > { %857 = vrot.lane.b32.xlu1 %v2014_v52, %s1658_s26  ;;  %855 = vrot.lane.b32.xlu0 %v2018_v53, %s1658_s26 }
  0xae   : > { %3002 = vst [vmem:[#allocation36_spill] sm:$0xff] %v2066_v54 }
  0xaf   : > { %v2036_v58 = vpop.permute.xlu1 %267  ;;  %v2038_v59 = vpop.permute.xlu0 %265 }
  0xb0   : > { %2995 = vst [vmem:[#allocation29_spill] sm:$0xff] %v2036_v58  ;;  %2996 = vst [vmem:[#allocation30_spill] sm:$0xff] %v2038_v59  ;;  %v2062_v58 = vmul.f32 %v1844_v20, %v1844_v20  ;;  %v255_v59 = vadd.f32 %v230_v47, %v1777_v11 }
  0xb1   : > { %861 = vrot.lane.b32.xlu1 %v2030_v56, %s1658_s26  ;;  %859 = vrot.lane.b32.xlu0 %v2034_v57, %s1658_s26 }
  0xb2   : > { %3001 = vst [vmem:[#allocation35_spill] sm:$0xff] %v2062_v58 }
  0xb3   : > { %v2052_v62 = vpop.permute.xlu1 %271  ;;  %v2054_v63 = vpop.permute.xlu0 %269 }
  0xb4   : > { %2999 = vst [vmem:[#allocation33_spill] sm:$0xff] %v2052_v62  ;;  %3000 = vst [vmem:[#allocation34_spill] sm:$0xff] %v2054_v63  ;;  %v2078_v63 = vmul.f32 %v1852_v22, %v1852_v22  ;;  %v2082_v62 = vmul.f32 %v1854_v23, %v1854_v23 }
  0xb5   : > { %865 = vrot.lane.b32.xlu1 %v2046_v60, %s1658_s26  ;;  %863 = vrot.lane.b32.xlu0 %v2050_v61, %s1658_s26 }
  0xb6   : > { %3004 = vst [vmem:[#allocation38_spill] sm:$0xff] %v2078_v63  ;;  %3005 = vst [vmem:[#allocation39_spill] sm:$0xff] %v2082_v62 }
  0xb7   : > { %v2068_v45 = vpop.permute.xlu1 %275  ;;  %v2070_v33 = vpop.permute.xlu0 %273 }
  0xb8   : > { %3003 = vst [vmem:[#allocation37_spill] sm:$0xff] %v2070_v33 }
  0xb9   : > { %869 = vrot.lane.b32.xlu1 %v2062_v58, %s1658_s26  ;;  %867 = vrot.lane.b32.xlu0 %v2066_v54, %s1658_s26 }
  0xbb   : > { %v280_v55 = vpop.permute.xlu1 %279  ;;  %v278_v33 = vpop.permute.xlu0 %277 }
  0xbc   : > { %v304_v31 = vadd.f32 %v280_v55, %v256_v32  ;;  %v2086_v30 = vadd.f32 %v278_v33, %v255_v59 }
  0xbd   : > { %873 = vrot.lane.b32.xlu1 %v2078_v63, %s1658_s26  ;;  %871 = vrot.lane.b32.xlu0 %v2082_v62, %s1658_s26 }
  0xbe   : > { %v336_v51 = vrot.slane %v304_v31, 1  ;;  %v373_v50 = vrot.slane %v304_v31, 2  ;;  %v2918_v43 = vrot.slane %v2086_v30, 1  ;;  %v2919_v42 = vrot.slane %v2086_v30, 2 }
  0xbf   : > { %v414_v46 = vpop.permute.xlu1 %413  ;;  %v412_v29 = vpop.permute.xlu0 %411 }
  0xc0   : > { %v337_v32 = vsel %vm317_vm0, %v2918_v43, %v336_v51  ;;  %v374_v33 = vsel %vm354_vm1, %v2919_v42, %v373_v50 }
  0xc1   : > { %693 = vrot.lane.b32.xlu1 %v1946_v34, %s1659_s27  ;;  %691 = vrot.lane.b32.xlu0 %v1950_v35, %s1659_s27  ;;  %v353_v31 = vadd.f32 %v337_v32, %v2086_v30 }
  0xc3   : > { %v418_v47 = vpop.permute.xlu1 %417  ;;  %v416_v55 = vpop.permute.xlu0 %415  ;;  %v2105_v59 = vadd.f32 %v374_v33, %v353_v31 }
  0xc4   : > { %v450_v35 = vadd.f32 %v418_v47, %v1820_v14  ;;  %v449_v34 = vadd.f32 %v416_v55, %v1822_v15  ;;  %v2159_v55 = vmul.f32 %v1820_v14, %v1743_v2  ;;  %v2172_v14 = vmul.f32 %v1822_v15, %v1735_v0 }
  0xc5   : > { %901 = vrot.lane.b32.xlu1 %v1998_v48, %s1659_s27  ;;  %899 = vrot.lane.b32.xlu0 %v2002_v49, %s1659_s27  ;;  %v2188_v15 = vmul.f32 %v1836_v18, %v1759_v6 }
  0xc6   : > { %3008 = vst [vmem:[#allocation42_spill] sm:$0xff] %v2159_v55  ;;  %3009 = vst [vmem:[#allocation43_spill] sm:$0xff] %v2172_v14 }
  0xc7   : > { %v422_v51 = vpop.permute.xlu1 %421  ;;  %v420_v43 = vpop.permute.xlu0 %419  ;;  %3013 = vst [vmem:[#allocation47_spill] sm:$0xff] %v2188_v15 }
  0xc9   : > { %905 = vrot.lane.b32.xlu1 %v2014_v52, %s1659_s27  ;;  %903 = vrot.lane.b32.xlu0 %v2018_v53, %s1659_s27 }
  0xcb   : > { %v2115_v32 = vpop.permute.xlu1 %425  ;;  %v2117_v50 = vpop.permute.xlu0 %423 }
  0xcd   : > { %909 = vrot.lane.b32.xlu1 %v2030_v56, %s1659_s27  ;;  %907 = vrot.lane.b32.xlu0 %v2034_v57, %s1659_s27  ;;  %v448_v57 = vadd.f32 %v414_v46, %v1812_v12  ;;  %v447_v56 = vadd.f32 %v412_v29, %v1814_v13  ;;  %v2153_v29 = vmul.f32 %v1814_v13, %v1737_v1 }
  0xcf   : > { %v2123_v31 = vpop.permute.xlu1 %429  ;;  %v2125_v33 = vpop.permute.xlu0 %427  ;;  %3007 = vst [vmem:[#allocation41_spill] sm:$0xff] %v2153_v29 }
  0xd1   : > { %913 = vrot.lane.b32.xlu1 %v2046_v60, %s1659_s27  ;;  %911 = vrot.lane.b32.xlu0 %v2050_v61, %s1659_s27  ;;  %v2143_v61 = vmul.f32 %v1812_v12, %v1745_v3  ;;  %v254_v12 = vadd.f32 %v1984_v44, %v1767_v8  ;;  %v452_v44 = vadd.f32 %v422_v51, %v1828_v16 }
  0xd3   : > { %v2131_v42 = vpop.permute.xlu1 %433  ;;  %v2133_v52 = vpop.permute.xlu0 %431  ;;  %3006 = vst [vmem:[#allocation40_spill] sm:$0xff] %v2143_v61 }
  0xd5   : > { %917 = vrot.lane.b32.xlu1 %v2062_v58, %s1659_s27  ;;  %915 = vrot.lane.b32.xlu0 %v2066_v54, %s1659_s27  ;;  %v2164_v54 = vadd.f32 %v2068_v45, %v254_v12  ;;  %v2184_v12 = vmul.f32 %v1830_v17, %v1753_v5 }
  0xd7   : > { %v462_v53 = vpop.permute.xlu1 %461  ;;  %v460_v49 = vpop.permute.xlu0 %459  ;;  %3012 = vst [vmem:[#allocation46_spill] sm:$0xff] %v2184_v12 }
  0xd8   : > { %v496_v60 = vadd.f32 %v462_v53, %v448_v57  ;;  %v495_v48 = vadd.f32 %v460_v49, %v447_v56 }
  0xd9   : > { %921 = vrot.lane.b32.xlu1 %v2078_v63, %s1659_s27  ;;  %919 = vrot.lane.b32.xlu0 %v2082_v62, %s1659_s27 }
  0xda   : > { %v520_v53 = vrot.slane %v496_v60, 1  ;;  %v556_v49 = vrot.slane %v496_v60, 2  ;;  %v519_v56 = vrot.slane %v495_v48, 1  ;;  %v555_v57 = vrot.slane %v495_v48, 2 }
  0xdb   : > { %v466_v46 = vpop.permute.xlu1 %465  ;;  %v464_v47 = vpop.permute.xlu0 %463 }
  0xdc   : > { %v521_v63 = vsel %vm317_vm0, %v519_v56, %v520_v53  ;;  %v557_v62 = vsel %vm354_vm1, %v555_v57, %v556_v49  ;;  %v498_v58 = vadd.f32 %v466_v46, %v450_v35  ;;  %v497_v13 = vadd.f32 %v464_v47, %v449_v34 }
  0xdd   : > { %v547_v28 = vadd.f32 %v521_v63, %v495_v48  ;;  %1081 = vrot.lane.b32.xlu1 %v2143_v61, %s1658_s26  ;;  %1079 = vrot.lane.b32.xlu0 %v2153_v29, %s1658_s26  ;;  %v451_v56 = vadd.f32 %v420_v43, %v1830_v17  ;;  %v2180_v63 = vmul.f32 %v1828_v16, %v1751_v4  ;;  %v333_v46 = vrot.slane %v2164_v54, 1 }
  0xde   : > { %v522_v35 = vrot.slane %v497_v13, 1  ;;  %v558_v34 = vrot.slane %v497_v13, 2  ;;  %v524_v47 = vrot.slane %v498_v58, 1  ;;  %v560_v13 = vrot.slane %v498_v58, 2 }
  0xdf   : > { %v2176_v57 = vadd.f32 %v557_v62, %v547_v28  ;;  %v470_v45 = vpop.permute.xlu1 %469  ;;  %v468_v48 = vpop.permute.xlu0 %467  ;;  %3011 = vst [vmem:[#allocation45_spill] sm:$0xff] %v2180_v63 }
  0xe0   : > { %v523_v43 = vsel %vm317_vm0, %v520_v53, %v522_v35  ;;  %v559_v51 = vsel %vm354_vm1, %v556_v49, %v558_v34  ;;  %v500_v28 = vadd.f32 %v470_v45, %v452_v44  ;;  %v499_v62 = vadd.f32 %v468_v48, %v451_v56 }
  0xe1   : > { %3010 = vst [vmem:[#allocation44_spill] sm:$0xff] %v2176_v57  ;;  %v548_v16 = vadd.f32 %v523_v43, %v496_v60  ;;  %1085 = vrot.lane.b32.xlu1 %v2159_v55, %s1658_s26  ;;  %1083 = vrot.lane.b32.xlu0 %v2172_v14, %s1658_s26  ;;  %v3014_v53 = vrot.slane %v2086_v30, 1  ;;  %v454_v44 = vadd.f32 %v2115_v32, %v1836_v18 }
  0xe2   : > { %v527_v17 = vrot.slane %v500_v28, 1  ;;  %v563_v57 = vrot.slane %v500_v28, 2  ;;  %v525_v6 = vrot.slane %v499_v62, 1  ;;  %v561_v41 = vrot.slane %v499_v62, 2 }
  0xe3   : > { %v335_v49 = vsel %vm317_vm0, %v333_v46, %v3014_v53  ;;  %v453_v60 = vadd.f32 %v2117_v50, %v1838_v19  ;;  %v2204_v56 = vadd.f32 %v559_v51, %v548_v16  ;;  %v474_v35 = vpop.permute.xlu1 %473  ;;  %v472_v34 = vpop.permute.xlu0 %471  ;;  %v2216_v18 = vmul.f32 %v1838_v19, %v1761_v7 }
  0xe4   : > { %v526_v45 = vsel %vm317_vm0, %v524_v47, %v525_v6  ;;  %v528_v48 = vsel %vm317_vm0, %v525_v6, %v527_v17  ;;  %v562_v43 = vsel %vm354_vm1, %v560_v13, %v561_v41  ;;  %v564_v28 = vsel %vm354_vm1, %v561_v41, %v563_v57 }
  0xe5   : > { %v549_v5 = vadd.f32 %v526_v45, %v498_v58  ;;  %v550_v46 = vadd.f32 %v528_v48, %v499_v62  ;;  %1089 = vrot.lane.b32.xlu1 %v2180_v63, %s1658_s26  ;;  %1087 = vrot.lane.b32.xlu0 %v2184_v12, %s1658_s26  ;;  %3015 = vst [vmem:[#allocation48_spill] sm:$0xff] %v2216_v18  ;;  %v370_v53 = vrot.slane %v2164_v54, 2 }
  0xe6   : > { %v352_v32 = vadd.f32 %v335_v49, %v2164_v54  ;;  %v502_v50 = vadd.f32 %v474_v35, %v454_v44  ;;  %v501_v6 = vadd.f32 %v472_v34, %v453_v60  ;;  %v456_v51 = vadd.f32 %v2123_v31, %v1844_v20 }
  0xe7   : > { %v455_v41 = vadd.f32 %v2125_v33, %v1846_v21  ;;  %v2223_v58 = vadd.f32 %v562_v43, %v549_v5  ;;  %v2225_v57 = vadd.f32 %v564_v28, %v550_v46  ;;  %v478_v62 = vpop.permute.xlu1 %477  ;;  %v476_v47 = vpop.permute.xlu0 %475  ;;  %v2234_v5 = vmul.f32 %v1844_v20, %v1767_v8 }
  0xe8   : > { %v530_v13 = vrot.slane %v502_v50, 1  ;;  %v566_v16 = vrot.slane %v502_v50, 2  ;;  %v529_v19 = vrot.slane %v501_v6, 1  ;;  %v565_v17 = vrot.slane %v501_v6, 2 }
  0xe9   : > { %v504_v49 = vadd.f32 %v478_v62, %v456_v51  ;;  %1093 = vrot.lane.b32.xlu1 %v2188_v15, %s1658_s26  ;;  %1091 = vrot.lane.b32.xlu0 %v2216_v18, %s1658_s26  ;;  %3016 = vst [vmem:[#allocation49_spill] sm:$0xff] %v2234_v5  ;;  %v2238_v31 = vmul.f32 %v1846_v21, %v1769_v9  ;;  %v3018_v35 = vrot.slane %v2086_v30, 2 }
  0xea   : > { %v458_v33 = vadd.f32 %v2131_v42, %v1852_v22  ;;  %v531_v54 = vsel %vm317_vm0, %v529_v19, %v530_v13  ;;  %v567_v44 = vsel %vm354_vm1, %v565_v17, %v566_v16  ;;  %v503_v60 = vadd.f32 %v476_v47, %v455_v41 }
  0xeb   : > { %3017 = vst [vmem:[#allocation50_spill] sm:$0xff] %v2238_v31  ;;  %v372_v34 = vsel %vm354_vm1, %v370_v53, %v3018_v35  ;;  %v457_v8 = vadd.f32 %v2133_v52, %v1854_v23  ;;  %v551_v20 = vadd.f32 %v531_v54, %v501_v6  ;;  %v482_v45 = vpop.permute.xlu1 %481  ;;  %v480_v48 = vpop.permute.xlu0 %479  ;;  %v2251_v21 = vmul.f32 %v1852_v22, %v1775_v10 }
  0xec   : > { %v389_v42 = vadd.f32 %v372_v34, %v352_v32  ;;  %v532_v43 = vrot.slane %v503_v60, 1  ;;  %v568_v28 = vrot.slane %v503_v60, 2  ;;  %v506_v46 = vadd.f32 %v482_v45, %v458_v33 }
  0xed   : > { %3019 = vst [vmem:[#allocation51_spill] sm:$0xff] %v2251_v21  ;;  %v2253_v51 = vadd.f32 %v567_v44, %v551_v20  ;;  %v505_v41 = vadd.f32 %v480_v48, %v457_v8  ;;  %1097 = vrot.lane.b32.xlu1 %v2234_v5, %s1658_s26  ;;  %1095 = vrot.lane.b32.xlu0 %v2238_v31, %s1658_s26  ;;  %v534_v6 = vrot.slane %v504_v49, 1  ;;  %v570_v54 = vrot.slane %v504_v49, 2 }
  0xee   : > { %v2261_v30 = vmul.f32 %v1854_v23, %v1777_v11  ;;  %v533_v10 = vsel %vm317_vm0, %v530_v13, %v532_v43  ;;  %v569_v22 = vsel %vm354_vm1, %v566_v16, %v568_v28  ;;  %v537_v52 = vrot.slane %v506_v46, 1 }
  0xef   : > { %v573_v32 = vrot.slane %v506_v46, 2  ;;  %v552_v62 = vadd.f32 %v533_v10, %v502_v50  ;;  %v535_v47 = vrot.slane %v505_v41, 1  ;;  %v571_v19 = vrot.slane %v505_v41, 2  ;;  %v626_v17 = vpop.permute.xlu1 %625  ;;  %v624_v53 = vpop.permute.xlu0 %623 }
  0xf0   : > { %3020 = vst [vmem:[#allocation52_spill] sm:$0xff] %v2261_v30  ;;  %v397_v33 = vmul.f32 0.11111111, %v389_v42  ;;  %v398_v44 = vmul.f32 0.11111111, %v2105_v59 }
  0xf1   : > { %v2266_v60 = vadd.f32 %v569_v22, %v552_v62  ;;  %v536_v11 = vsel %vm317_vm0, %v534_v6, %v535_v47  ;;  %v538_v23 = vsel %vm317_vm0, %v535_v47, %v537_v52  ;;  %1101 = vrot.lane.b32.xlu1 %v2251_v21, %s1658_s26  ;;  %v572_v50 = vsel %vm354_vm1, %v570_v54, %v571_v19 }
  0xf2   : > { %v553_v13 = vadd.f32 %v536_v11, %v504_v49  ;;  %v554_v16 = vadd.f32 %v538_v23, %v505_v41  ;;  %v574_v35 = vsel %vm354_vm1, %v571_v19, %v573_v32  ;;  %1099 = vrot.lane.b32.xlu0 %v2261_v30, %s1658_s26  ;;  %v1289_v45 = vmul.f32 2.0, %v397_v33 }
  0xf3   : > { %v630_v34 = vpop.permute.xlu1 %629  ;;  %v628_v59 = vpop.permute.xlu0 %627  ;;  %v1290_v48 = vmul.f32 2.0, %v398_v44  ;;  %v2286_v10 = vmul.f32 %v397_v33, %v397_v33  ;;  %v2288_v22 = vmul.f32 %v398_v44, %v398_v44 }
  0xf4   : > { %v589_v8 = vadd.f32 %v572_v50, %v553_v13  ;;  %v590_v20 = vadd.f32 %v574_v35, %v554_v16 }
  0xf5   : > { %1129 = vrot.lane.b32.xlu1 %v2143_v61, %s1659_s27 }
  0xf6   : > { %v597_v42 = vmul.f32 0.11111111, %v589_v8  ;;  %v598_v43 = vmul.f32 0.11111111, %v590_v20  ;;  %1127 = vrot.lane.b32.xlu0 %v2153_v29, %s1659_s27 }
  0xf7   : > { %v634_v49 = vpop.permute.xlu1 %633  ;;  %v632_v28 = vpop.permute.xlu0 %631 }
  0xf8   : > { %v2280_v46 = vmul.f32 %v1289_v45, %v597_v42  ;;  %v2282_v41 = vmul.f32 %v1290_v48, %v598_v43  ;;  %v2290_v52 = vmul.f32 %v597_v42, %v597_v42  ;;  %v2292_v32 = vmul.f32 %v598_v43, %v598_v43 }
  0xf9   : > { %1133 = vrot.lane.b32.xlu1 %v2159_v55, %s1659_s27  ;;  %v2310_v54 = vmul.f32 %v597_v42, %v397_v33  ;;  %v2312_v11 = vmul.f32 %v598_v43, %v398_v44  ;;  %v660_v33 = vadd.f32 %v626_v17, %v1886_v24  ;;  %v659_v44 = vadd.f32 %v624_v53, %v1890_v25 }
  0xfa   : > { %3021 = vst [vmem:[#allocation53_spill] sm:$0xff] %v2280_v46  ;;  %3022 = vst [vmem:[#allocation54_spill] sm:$0xff] %v2282_v41  ;;  %1131 = vrot.lane.b32.xlu0 %v2172_v14, %s1659_s27  ;;  %v2302_v47 = vadd.f32 %v2290_v52, %v2286_v10  ;;  %v2306_v19 = vadd.f32 %v2292_v32, %v2288_v22  ;;  %v662_v48 = vadd.f32 %v630_v34, %v1898_v26 }
  0xfb   : > { %v2296_v6 = vpop.permute.xlu1 %637  ;;  %v2298_v62 = vpop.permute.xlu0 %635  ;;  %3024 = vst [vmem:[#allocation56_spill] sm:$0xff] %v2310_v54  ;;  %3025 = vst [vmem:[#allocation57_spill] sm:$0xff] %v2312_v11  ;;  %v661_v42 = vadd.f32 %v628_v59, %v1902_v27  ;;  %v247_v25 = vadd.f32 %v1952_v36, %v1735_v0  ;;  %v245_v17 = vadd.f32 %v1954_v37, %v1737_v1  ;;  %v3026_v36 = vld [vmem:[#allocation5_spill] sm:$0xff]  ;;  %v3028_v11 = vld [vmem:[#allocation7_spill] sm:$0xff] }
  0xfc   : > { %3023 = vst [vmem:[#allocation55_spill] sm:$0xff] %v2306_v19  ;;  %v248_v26 = vadd.f32 %v1960_v38, %v1743_v2  ;;  %v250_v0 = vadd.f32 %v1968_v40, %v1751_v4  ;;  %v664_v2 = vadd.f32 %v634_v49, %v3028_v11  ;;  %v3029_v38 = vld [vmem:[#allocation8_spill] sm:$0xff] }
  0xfd   : > { %1137 = vrot.lane.b32.xlu1 %v2180_v63, %s1659_s27  ;;  %v663_v54 = vadd.f32 %v632_v28, %v3029_v38 }
  0xfe   : > { %1135 = vrot.lane.b32.xlu0 %v2184_v12, %s1659_s27 }
  0xff   : > { %v2316_v23 = vpop.permute.xlu1 %641  ;;  %v2318_v13 = vpop.permute.xlu0 %639 }
 0x101   : > { %1141 = vrot.lane.b32.xlu1 %v2188_v15, %s1659_s27 }
 0x102   : > { %1139 = vrot.lane.b32.xlu0 %v2216_v18, %s1659_s27 }
 0x103   : > { %v2324_v16 = vpop.permute.xlu1 %645  ;;  %v2326_v50 = vpop.permute.xlu0 %643 }
 0x105   : > { %1145 = vrot.lane.b32.xlu1 %v2234_v5, %s1659_s27 }
 0x106   : > { %1143 = vrot.lane.b32.xlu0 %v2238_v31, %s1659_s27 }
 0x107   : > { %v674_v35 = vpop.permute.xlu1 %673  ;;  %v672_v8 = vpop.permute.xlu0 %671 }
 0x108   : > { %v708_v20 = vadd.f32 %v674_v35, %v660_v33  ;;  %v707_v45 = vadd.f32 %v672_v8, %v659_v44  ;;  %v246_v35 = vadd.f32 %v1962_v39, %v1745_v3  ;;  %v3027_v8 = vld [vmem:[#allocation15_spill] sm:$0xff]  ;;  %v3033_v3 = vld [vmem:[#allocation21_spill] sm:$0xff] }
 0x109   : > { %1149 = vrot.lane.b32.xlu1 %v2251_v21, %s1659_s27  ;;  %v249_v1 = vadd.f32 %v3027_v8, %v3026_v36  ;;  %v3030_v21 = vld [vmem:[#allocation6_spill] sm:$0xff] }
 0x10a   : > { %v732_v43 = vrot.slane %v708_v20, 1  ;;  %v768_v41 = vrot.slane %v708_v20, 2  ;;  %v731_v46 = vrot.slane %v707_v45, 1  ;;  %v767_v24 = vrot.slane %v707_v45, 2  ;;  %1147 = vrot.lane.b32.xlu0 %v2261_v30, %s1659_s27 }
 0x10b   : > { %v678_v27 = vpop.permute.xlu1 %677  ;;  %v676_v53 = vpop.permute.xlu0 %675  ;;  %v2361_v39 = vadd.f32 %v3033_v3, %v246_v35 }
 0x10c   : > { %v733_v34 = vsel %vm317_vm0, %v731_v46, %v732_v43  ;;  %v769_v59 = vsel %vm354_vm1, %v767_v24, %v768_v41  ;;  %v710_v33 = vadd.f32 %v678_v27, %v662_v48  ;;  %v709_v44 = vadd.f32 %v676_v53, %v661_v42  ;;  %v3031_v24 = vld [vmem:[#allocation16_spill] sm:$0xff]  ;;  %v3032_v42 = vld [vmem:[#allocation17_spill] sm:$0xff] }
 0x10d   : > { %v759_v37 = vadd.f32 %v733_v34, %v707_v45  ;;  %v252_v48 = vadd.f32 %v3031_v24, %v3030_v21  ;;  %v251_v27 = vadd.f32 %v3032_v42, %v1761_v7  ;;  %v3034_v34 = vld [vmem:[#allocation22_spill] sm:$0xff] }
 0x10e   : > { %v734_v30 = vrot.slane %v709_v44, 1  ;;  %v770_v46 = vrot.slane %v709_v44, 2  ;;  %v2368_v44 = vadd.f32 %v3034_v34, %v245_v17  ;;  %v736_v21 = vrot.slane %v710_v33, 1 }
 0x10f   : > { %v2363_v4 = vadd.f32 %v769_v59, %v759_v37  ;;  %v682_v40 = vpop.permute.xlu1 %681  ;;  %v680_v53 = vpop.permute.xlu0 %679  ;;  %v772_v36 = vrot.slane %v710_v33, 2  ;;  %v319_v59 = vrot.slane %v2361_v39, 1  ;;  %v3035_v37 = vld [vmem:[#allocation9_spill] sm:$0xff] }
 0x110   : > { %v735_v45 = vsel %vm317_vm0, %v732_v43, %v734_v30  ;;  %v771_v49 = vsel %vm354_vm1, %v768_v41, %v770_v46  ;;  %v712_v28 = vadd.f32 %v682_v40, %v664_v2  ;;  %v711_v11 = vadd.f32 %v680_v53, %v663_v54  ;;  %v3036_v30 = vld [vmem:[#allocation10_spill] sm:$0xff] }
 0x111   : > { %v760_v8 = vadd.f32 %v735_v45, %v708_v20  ;;  %v666_v42 = vadd.f32 %v2296_v6, %v3035_v37  ;;  %v665_v41 = vadd.f32 %v2298_v62, %v3036_v30  ;;  %v3037_v40 = vld [vmem:[#allocation26_spill] sm:$0xff]  ;;  %v318_v34 = vrot.slane %v2368_v44, 1  ;;  %v3040_v30 = vld [vmem:[#allocation12_spill] sm:$0xff] }
 0x112   : > { %v739_v7 = vrot.slane %v712_v28, 1  ;;  %v775_v38 = vrot.slane %v712_v28, 2  ;;  %v737_v35 = vrot.slane %v711_v11, 1  ;;  %v773_v24 = vrot.slane %v711_v11, 2  ;;  %v3038_v62 = vld [vmem:[#allocation30_spill] sm:$0xff] }
 0x113   : > { %v2375_v43 = vadd.f32 %v771_v49, %v760_v8  ;;  %v686_v54 = vpop.permute.xlu1 %685  ;;  %v684_v17 = vpop.permute.xlu0 %683  ;;  %v295_v53 = vadd.f32 %v3037_v40, %v247_v25  ;;  %v2384_v49 = vadd.f32 %v3038_v62, %v249_v1  ;;  %v3039_v8 = vld [vmem:[#allocation11_spill] sm:$0xff]  ;;  %v3041_v1 = vld [vmem:[#allocation18_spill] sm:$0xff] }
 0x114   : > { %v738_v2 = vsel %vm317_vm0, %v736_v21, %v737_v35  ;;  %v740_v20 = vsel %vm317_vm0, %v737_v35, %v739_v7  ;;  %v774_v46 = vsel %vm354_vm1, %v772_v36, %v773_v24  ;;  %v776_v3 = vsel %vm354_vm1, %v773_v24, %v775_v38 }
 0x115   : > { %v761_v45 = vadd.f32 %v738_v2, %v710_v33  ;;  %v762_v28 = vadd.f32 %v740_v20, %v711_v11  ;;  %v714_v6 = vadd.f32 %v686_v54, %v666_v42  ;;  %v668_v37 = vadd.f32 %v2316_v23, %v3039_v8  ;;  %v3042_v23 = vld [vmem:[#allocation25_spill] sm:$0xff]  ;;  %v3045_v8 = vld [vmem:[#allocation34_spill] sm:$0xff] }
 0x116   : > { %v713_v21 = vadd.f32 %v684_v17, %v665_v41  ;;  %v667_v7 = vadd.f32 %v2318_v13, %v3040_v30  ;;  %v253_v2 = vadd.f32 %v3041_v1, %v1769_v9  ;;  %v296_v41 = vadd.f32 %v3042_v23, %v248_v26  ;;  %v3043_v13 = vld [vmem:[#allocation29_spill] sm:$0xff] }
 0x117   : > { %v2390_v36 = vadd.f32 %v774_v46, %v761_v45  ;;  %v2392_v38 = vadd.f32 %v776_v3, %v762_v28  ;;  %v742_v25 = vrot.slane %v714_v6, 1  ;;  %v690_v33 = vpop.permute.xlu1 %689  ;;  %v688_v11 = vpop.permute.xlu0 %687  ;;  %v778_v35 = vrot.slane %v714_v6, 2  ;;  %v3044_v28 = vld [vmem:[#allocation33_spill] sm:$0xff] }
 0x118   : > { %v741_v24 = vrot.slane %v713_v21, 1  ;;  %v777_v42 = vrot.slane %v713_v21, 2  ;;  %v2394_v54 = vadd.f32 %v690_v33, %v668_v37  ;;  %v321_v17 = vrot.slane %v295_v53, 1  ;;  %v3046_v23 = vld [vmem:[#allocation37_spill] sm:$0xff] }
 0x119   : > { %v715_v20 = vadd.f32 %v688_v11, %v667_v7  ;;  %v298_v46 = vadd.f32 %v3043_v13, %v250_v0  ;;  %v324_v3 = vrot.slane %v2384_v49, 1  ;;  %v2404_v62 = vadd.f32 %v3044_v28, %v252_v48 }
 0x11a   : > { %v743_v40 = vsel %vm317_vm0, %v741_v24, %v742_v25  ;;  %v779_v45 = vsel %vm354_vm1, %v777_v42, %v778_v35  ;;  %v299_v37 = vadd.f32 %v3045_v8, %v251_v27  ;;  %v356_v7 = vrot.slane %v2361_v39, 2 }
 0x11b   : > { %v763_v30 = vadd.f32 %v743_v40, %v713_v21  ;;  %v744_v33 = vrot.slane %v715_v20, 1  ;;  %v2407_v9 = vpop.permute.xlu1 %853  ;;  %v2409_v26 = vpop.permute.xlu0 %851  ;;  %v320_v0 = vsel %vm317_vm0, %v318_v34, %v319_v59  ;;  %v355_v11 = vrot.slane %v2368_v44, 2 }
 0x11c   : > { %v780_v24 = vrot.slane %v715_v20, 2  ;;  %v323_v1 = vrot.slane %v296_v41, 1  ;;  %v322_v42 = vsel %vm317_vm0, %v319_v59, %v321_v17  ;;  %v326_v21 = vrot.slane %v298_v46, 1 }
 0x11d   : > { %v2415_v48 = vadd.f32 %v779_v45, %v763_v30  ;;  %v745_v27 = vsel %vm317_vm0, %v742_v25, %v744_v33  ;;  %v301_v13 = vadd.f32 %v3046_v23, %v253_v2  ;;  %v358_v8 = vrot.slane %v295_v53, 2  ;;  %v3047_v23 = vld [vmem:[#allocation44_spill] sm:$0xff] }
 0x11e   : > { %v764_v40 = vadd.f32 %v745_v27, %v714_v6  ;;  %v781_v28 = vsel %vm354_vm1, %v778_v35, %v780_v24  ;;  %v325_v31 = vsel %vm317_vm0, %v323_v1, %v324_v3  ;;  %v329_v34 = vrot.slane %v2404_v62, 1 }
 0x11f   : > { %v328_v5 = vrot.slane %v299_v37, 1  ;;  %v2422_v20 = vpop.permute.xlu1 %857  ;;  %v2424_v18 = vpop.permute.xlu0 %855  ;;  %v346_v59 = vadd.f32 %v320_v0, %v2368_v44  ;;  %v347_v25 = vadd.f32 %v322_v42, %v2361_v39  ;;  %v361_v6 = vrot.slane %v2384_v49, 2 }
 0x120   : > { %v2428_v17 = vadd.f32 %v781_v28, %v764_v40  ;;  %v327_v35 = vsel %vm317_vm0, %v324_v3, %v326_v21  ;;  %v348_v53 = vadd.f32 %v325_v31, %v296_v41  ;;  %v331_v2 = vrot.slane %v301_v13, 1 }
 0x121   : > { %v357_v45 = vsel %vm354_vm1, %v355_v11, %v356_v7  ;;  %v360_v30 = vrot.slane %v296_v41, 2  ;;  %v359_v33 = vsel %vm354_vm1, %v356_v7, %v358_v8  ;;  %v330_v24 = vsel %vm317_vm0, %v328_v5, %v329_v34 }
 0x122   : > { %v383_v39 = vadd.f32 %v357_v45, %v346_v59  ;;  %v384_v0 = vadd.f32 %v359_v33, %v347_v25  ;;  %v363_v42 = vrot.slane %v298_v46, 2  ;;  %v349_v27 = vadd.f32 %v327_v35, %v2384_v49 }
 0x123   : > { %v2435_v1 = vpop.permute.xlu1 %861  ;;  %v2437_v44 = vpop.permute.xlu0 %859  ;;  %v362_v3 = vsel %vm354_vm1, %v360_v30, %v361_v6  ;;  %v366_v31 = vrot.slane %v2404_v62, 2  ;;  %v365_v21 = vrot.slane %v299_v37, 2  ;;  %v350_v41 = vadd.f32 %v330_v24, %v299_v37 }
 0x124   : > { %v385_v11 = vadd.f32 %v362_v3, %v348_v53  ;;  %v332_v7 = vsel %vm317_vm0, %v329_v34, %v331_v2  ;;  %v2444_v5 = vmul.f32 0.11111111, %v3047_v23  ;;  %v2447_v40 = vmul.f32 0.11111111, %v2204_v56 }
 0x125   : > { %v2453_v49 = vmul.f32 0.11111111, %v383_v39  ;;  %v364_v8 = vsel %vm354_vm1, %v361_v6, %v363_v42  ;;  %v368_v59 = vrot.slane %v301_v13, 2  ;;  %v2457_v25 = vmul.f32 0.11111111, %v2223_v58 }
 0x126   : > { %3048 = vst [vmem:[#allocation5_spill] sm:$0xff] %v2444_v5  ;;  %3049 = vst [vmem:[#allocation15_spill] sm:$0xff] %v2447_v40  ;;  %v2459_v37 = vmul.f32 0.11111111, %v384_v0  ;;  %v386_v34 = vadd.f32 %v364_v8, %v349_v27  ;;  %v367_v35 = vsel %vm354_vm1, %v365_v21, %v366_v31  ;;  %v351_v56 = vadd.f32 %v332_v7, %v2404_v62 }
 0x127   : > { %v2449_v28 = vpop.permute.xlu1 %865  ;;  %v2451_v46 = vpop.permute.xlu0 %863  ;;  %3050 = vst [vmem:[#allocation7_spill] sm:$0xff] %v2457_v25  ;;  %v2463_v53 = vmul.f32 0.11111111, %v385_v11  ;;  %v387_v2 = vadd.f32 %v367_v35, %v350_v41  ;;  %v2467_v45 = vmul.f32 %v2444_v5, %v2444_v5  ;;  %v2470_v6 = vmul.f32 0.11111111, %v2225_v57  ;;  %v3059_v35 = vld [vmem:[#allocation14_spill] sm:$0xff] }
 0x128   : > { %3051 = vst [vmem:[#allocation8_spill] sm:$0xff] %v2459_v37  ;;  %v2478_v30 = vmul.f32 %v2447_v40, %v2447_v40  ;;  %v369_v62 = vsel %vm354_vm1, %v366_v31, %v368_v59  ;;  %v2483_v33 = vmul.f32 %v2453_v49, %v2453_v49  ;;  %v2487_v24 = vmul.f32 %v2457_v25, %v2457_v25 }
 0x129   : > { %3052 = vst [vmem:[#allocation6_spill] sm:$0xff] %v2463_v53  ;;  %3053 = vst [vmem:[#allocation16_spill] sm:$0xff] %v2470_v6  ;;  %v2489_v57 = vmul.f32 0.11111111, %v386_v34  ;;  %v388_v39 = vadd.f32 %v369_v62, %v351_v56  ;;  %v2493_v0 = vmul.f32 %v2459_v37, %v2459_v37  ;;  %v2495_v42 = vmul.f32 0.11111111, %v387_v2 }
 0x12a   : > { %v2499_v27 = vmul.f32 %v2463_v53, %v2463_v53  ;;  %v1331_v3 = vadd.f32 %v2467_v45, %v2483_v33  ;;  %v2504_v31 = vmul.f32 0.11111111, %v2253_v51  ;;  %v2507_v21 = vmul.f32 0.11111111, %v2266_v60  ;;  %v3058_v60 = vld [vmem:[#allocation13_spill] sm:$0xff] }
 0x12b   : > { %v2472_v13 = vpop.permute.xlu1 %869  ;;  %v2474_v58 = vpop.permute.xlu0 %867  ;;  %3054 = vst [vmem:[#allocation17_spill] sm:$0xff] %v2489_v57  ;;  %3055 = vst [vmem:[#allocation21_spill] sm:$0xff] %v2495_v42  ;;  %v1332_v7 = vadd.f32 %v2478_v30, %v2493_v0  ;;  %v2517_v23 = vmul.f32 %v2470_v6, %v2470_v6  ;;  %v2521_v59 = vmul.f32 0.11111111, %v388_v39  ;;  %v2525_v51 = vmul.f32 %v2489_v57, %v2489_v57 }
 0x12c   : > { %3056 = vst [vmem:[#allocation22_spill] sm:$0xff] %v2504_v31  ;;  %3057 = vst [vmem:[#allocation9_spill] sm:$0xff] %v2507_v21  ;;  %v1333_v8 = vadd.f32 %v2487_v24, %v2499_v27  ;;  %v670_v34 = vadd.f32 %v2324_v16, %v3058_v60  ;;  %v669_v56 = vadd.f32 %v2326_v50, %v3059_v35  ;;  %v2535_v62 = vadd.f32 0.0001, %v1331_v3 }
 0x12d   : > { %v2533_v2 = vmul.f32 %v2495_v42, %v2495_v42  ;;  %v2537_v39 = vadd.f32 0.0001, %v1332_v7  ;;  %v1334_v63 = vadd.f32 %v2517_v23, %v2525_v51  ;;  %v2543_v14 = vmul.f32 %v2504_v31, %v2504_v31 }
 0x12e   : > { %v2547_v16 = vmul.f32 %v2507_v21, %v2507_v21  ;;  %v2550_v50 = vmul.f32 0.11111111, %v2363_v4  ;;  %v2552_v35 = vadd.f32 0.0001, %v1333_v8  ;;  %v2555_v7 = vmul.f32 0.11111111, %v2375_v43 }
 0x12f   : > { %v2509_v11 = vpop.permute.xlu1 %873  ;;  %v2511_v41 = vpop.permute.xlu0 %871  ;;  %v2558_v55 = vmul.f32 0.11111111, %v2390_v36  ;;  %v746_v29 = vrot.slane %v2394_v54, 1  ;;  %v782_v61 = vrot.slane %v2394_v54, 2  ;;  %v2563_v4 = vmul.f32 0.11111111, %v2392_v38 }
 0x130   : > { %v3061_v8 = vld [vmem:[#allocation20_spill] sm:$0xff] }
 0x131   : > { %v887_v43 = vadd.f32 %v2409_v26, %v3061_v8  ;;  %v819_v26 = vsub.f32 %v2550_v50, %v2483_v33 }
 0x133   : > { %v694_v15 = vpop.permute.xlu1 %693  ;;  %v692_v12 = vpop.permute.xlu0 %691 }
 0x134   : > { %v718_v3 = vadd.f32 %v694_v15, %v670_v34  ;;  %v717_v60 = vadd.f32 %v692_v12, %v669_v56  ;;  %v3060_v12 = vld [vmem:[#allocation19_spill] sm:$0xff]  ;;  %v2569_v56 = vadd.f32 0.0001, %v1334_v63 }
 0x135   : > { %v888_v15 = vadd.f32 %v2407_v9, %v3060_v12  ;;  %v3062_v12 = vld [vmem:[#allocation24_spill] sm:$0xff] }
 0x136   : > { %v749_v31 = vrot.slane %v718_v3, 1  ;;  %v785_v21 = vrot.slane %v718_v3, 2  ;;  %v747_v6 = vrot.slane %v717_v60, 1  ;;  %v783_v25 = vrot.slane %v717_v60, 2 }
 0x137   : > { %v902_v34 = vpop.permute.xlu1 %901  ;;  %v900_v36 = vpop.permute.xlu0 %899 }
 0x138   : > { %v748_v40 = vsel %vm317_vm0, %v746_v29, %v747_v6  ;;  %v750_v5 = vsel %vm317_vm0, %v747_v6, %v749_v31  ;;  %v784_v3 = vsel %vm354_vm1, %v782_v61, %v783_v25  ;;  %v786_v42 = vsel %vm354_vm1, %v783_v25, %v785_v21  ;;  %v3063_v61 = vld [vmem:[#allocation23_spill] sm:$0xff] }
 0x139   : > { %v765_v38 = vadd.f32 %v748_v40, %v2394_v54  ;;  %v766_v57 = vadd.f32 %v750_v5, %v717_v60  ;;  %v936_v53 = vadd.f32 %v902_v34, %v888_v15  ;;  %v935_v9 = vadd.f32 %v900_v36, %v887_v43  ;;  %v3064_v36 = vld [vmem:[#allocation27_spill] sm:$0xff] }
 0x13a   : > { %v889_v6 = vadd.f32 %v2424_v18, %v3062_v12  ;;  %v890_v25 = vadd.f32 %v2422_v20, %v3063_v61  ;;  %v892_v20 = vadd.f32 %v2435_v1, %v3064_v36 }
 0x13b   : > { %v801_v31 = vadd.f32 %v784_v3, %v765_v38  ;;  %v802_v54 = vadd.f32 %v786_v42, %v766_v57  ;;  %v960_v5 = vrot.slane %v936_v53, 1  ;;  %v906_v40 = vpop.permute.xlu1 %905  ;;  %v904_v21 = vpop.permute.xlu0 %903  ;;  %v996_v60 = vrot.slane %v936_v53, 2  ;;  %v3065_v3 = vld [vmem:[#allocation28_spill] sm:$0xff]  ;;  %v3066_v42 = vld [vmem:[#allocation31_spill] sm:$0xff] }
 0x13c   : > { %v959_v15 = vrot.slane %v935_v9, 1  ;;  %v995_v33 = vrot.slane %v935_v9, 2  ;;  %v937_v50 = vadd.f32 %v904_v21, %v889_v6  ;;  %v938_v18 = vadd.f32 %v906_v40, %v890_v25 }
 0x13d   : > { %v2588_v43 = vmul.f32 0.11111111, %v801_v31  ;;  %v2590_v34 = vmul.f32 0.11111111, %v802_v54  ;;  %v891_v57 = vadd.f32 %v2437_v44, %v3065_v3  ;;  %v894_v38 = vadd.f32 %v2449_v28, %v3066_v42  ;;  %v3067_v3 = vld [vmem:[#allocation32_spill] sm:$0xff] }
 0x13e   : > { %v961_v12 = vsel %vm317_vm0, %v959_v15, %v960_v5  ;;  %v962_v54 = vrot.slane %v937_v50, 1  ;;  %v997_v1 = vsel %vm354_vm1, %v995_v33, %v996_v60  ;;  %v998_v21 = vrot.slane %v937_v50, 2 }
 0x13f   : > { %v987_v31 = vadd.f32 %v961_v12, %v935_v9  ;;  %v910_v25 = vpop.permute.xlu1 %909  ;;  %v908_v40 = vpop.permute.xlu0 %907  ;;  %v893_v28 = vadd.f32 %v2451_v46, %v3067_v3  ;;  %v964_v15 = vrot.slane %v938_v18, 1  ;;  %v1000_v6 = vrot.slane %v938_v18, 2 }
 0x140   : > { %v940_v36 = vadd.f32 %v910_v25, %v892_v20  ;;  %v939_v44 = vadd.f32 %v908_v40, %v891_v57  ;;  %v963_v8 = vsel %vm317_vm0, %v960_v5, %v962_v54  ;;  %v999_v12 = vsel %vm354_vm1, %v996_v60, %v998_v21  ;;  %v3068_v20 = vld [vmem:[#allocation36_spill] sm:$0xff] }
 0x141   : > { %v1023_v42 = vadd.f32 %v997_v1, %v987_v31  ;;  %v988_v29 = vadd.f32 %v963_v8, %v936_v53  ;;  %v895_v57 = vadd.f32 %v2474_v58, %v3068_v20 }
 0x142   : > { %v967_v63 = vrot.slane %v940_v36, 1  ;;  %v1003_v61 = vrot.slane %v940_v36, 2  ;;  %v965_v37 = vrot.slane %v939_v44, 1  ;;  %v1001_v19 = vrot.slane %v939_v44, 2 }
 0x143   : > { %v1031_v9 = vmul.f32 0.11111111, %v1023_v42  ;;  %v914_v33 = vpop.permute.xlu1 %913  ;;  %v912_v50 = vpop.permute.xlu0 %911  ;;  %v1024_v25 = vadd.f32 %v999_v12, %v988_v29 }
 0x144   : > { %v942_v46 = vadd.f32 %v914_v33, %v894_v38  ;;  %v941_v31 = vadd.f32 %v912_v50, %v893_v28  ;;  %v966_v5 = vsel %vm317_vm0, %v964_v15, %v965_v37  ;;  %v968_v53 = vsel %vm317_vm0, %v965_v37, %v967_v63  ;;  %v3070_v33 = vld [vmem:[#allocation35_spill] sm:$0xff] }
 0x145   : > { %v1047_v40 = vsub.f32 %v1031_v9, %v2467_v45  ;;  %v1002_v8 = vsel %vm354_vm1, %v1000_v6, %v1001_v19  ;;  %v1032_v54 = vmul.f32 0.11111111, %v1024_v25  ;;  %v989_v60 = vadd.f32 %v966_v5, %v938_v18 }
 0x146   : > { %v990_v1 = vadd.f32 %v968_v53, %v939_v44  ;;  %v1004_v21 = vsel %vm354_vm1, %v1001_v19, %v1003_v61  ;;  %v970_v3 = vrot.slane %v942_v46, 1  ;;  %v1006_v42 = vrot.slane %v942_v46, 2 }
 0x147   : > { %v1347_v36 = vadd.f32 %v1047_v40, %v819_v26  ;;  %v969_v58 = vrot.slane %v941_v31, 1  ;;  %v918_v29 = vpop.permute.xlu1 %917  ;;  %v916_v38 = vpop.permute.xlu0 %915  ;;  %v1048_v28 = vsub.f32 %v1032_v54, %v2478_v30  ;;  %v1025_v45 = vadd.f32 %v1002_v8, %v989_v60  ;;  %v3071_v30 = vld [vmem:[#allocation38_spill] sm:$0xff] }
 0x148   : > { %v1026_v9 = vadd.f32 %v1004_v21, %v990_v1  ;;  %v1005_v15 = vrot.slane %v941_v31, 2  ;;  %v807_v37 = vmul.f32 0.11111111, %v2415_v48  ;;  %v943_v18 = vadd.f32 %v916_v38, %v895_v57 }
 0x149   : > { %v1355_v63 = vadd.f32 0.0009, %v1347_v36  ;;  %v971_v6 = vsel %vm317_vm0, %v969_v58, %v970_v3  ;;  %v3069_v19 = vsub.f32 %v2555_v7, %v2493_v0  ;;  %v1033_v61 = vmul.f32 0.11111111, %v1025_v45 }
 0x14a   : > { %v1034_v44 = vmul.f32 0.11111111, %v1026_v9  ;;  %v991_v12 = vadd.f32 %v971_v6, %v941_v31  ;;  %v896_v50 = vadd.f32 %v2472_v13, %v3070_v33  ;;  %v898_v20 = vadd.f32 %v2509_v11, %v3071_v30 }
 0x14b   : > { %v1348_v26 = vadd.f32 %v1048_v28, %v3069_v19  ;;  %v2626_v25 = vmul.f32 %v1355_v63, %v2535_v62  ;;  %v1007_v48 = vsel %vm354_vm1, %v1005_v15, %v1006_v42  ;;  %v922_v40 = vpop.permute.xlu1 %921  ;;  %v920_v57 = vpop.permute.xlu0 %919  ;;  %v1049_v0 = vsub.f32 %v1033_v61, %v2487_v24  ;;  %v3074_v24 = vld [vmem:[#allocation39_spill] sm:$0xff] }
 0x14c   : > { %v1050_v7 = vsub.f32 %v1034_v44, %v2517_v23  ;;  %v1027_v53 = vadd.f32 %v1007_v48, %v991_v12  ;;  %v944_v31 = vadd.f32 %v918_v29, %v896_v50  ;;  %v972_v8 = vrot.slane %v943_v18, 1 }
 0x14d   : > { %v1356_v5 = vadd.f32 0.0009, %v1348_v26  ;;  %v1008_v54 = vrot.slane %v943_v18, 2  ;;  %v946_v13 = vadd.f32 %v922_v40, %v898_v20  ;;  %v3072_v11 = vsub.f32 %v2558_v55, %v2499_v27 }
 0x14e   : > { %v3073_v1 = vsub.f32 %v2563_v4, %v2525_v51  ;;  %v1035_v36 = vmul.f32 0.11111111, %v1027_v53  ;;  %v897_v23 = vadd.f32 %v2511_v41, %v3074_v24  ;;  %v1335_v58 = vadd.f32 %v2543_v14, %v2533_v2 }
 0x14f   : > { %v2632_v60 = vmul.f32 %v1356_v5, %v2537_v39  ;;  %v1349_v62 = vadd.f32 %v1049_v0, %v3072_v11  ;;  %v973_v29 = vsel %vm317_vm0, %v970_v3, %v972_v8  ;;  %v1009_v39 = vsel %vm354_vm1, %v1006_v42, %v1008_v54  ;;  %v2646_v38 = vpop.permute.xlu1 %1081  ;;  %v2648_v28 = vpop.permute.xlu0 %1079 }
 0x150   : > { %v1350_v21 = vadd.f32 %v1050_v7, %v3073_v1  ;;  %v823_v55 = vsub.f32 %v807_v37, %v2533_v2  ;;  %v1051_v4 = vsub.f32 %v1035_v36, %v2543_v14  ;;  %v808_v45 = vmul.f32 0.11111111, %v2428_v17 }
 0x151   : > { %v1357_v27 = vadd.f32 0.0009, %v1349_v62  ;;  %v992_v41 = vadd.f32 %v973_v29, %v942_v46  ;;  %v977_v9 = vrot.slane %v946_v13, 1  ;;  %v945_v15 = vadd.f32 %v920_v57, %v897_v23 }
 0x152   : > { %v1358_v51 = vadd.f32 0.0009, %v1350_v21  ;;  %v1351_v42 = vadd.f32 %v1051_v4, %v823_v55  ;;  %v974_v6 = vrot.slane %v944_v31, 1  ;;  %v1013_v19 = vrot.slane %v946_v13, 2 }
 0x153   : > { %v2654_v63 = vmul.f32 %v1357_v27, %v2552_v35  ;;  %v1028_v18 = vadd.f32 %v1009_v39, %v992_v41  ;;  %v975_v2 = vrot.slane %v945_v15, 1  ;;  %v1011_v37 = vrot.slane %v945_v15, 2  ;;  %v2659_v26 = vpop.permute.xlu1 %1085  ;;  %v2661_v14 = vpop.permute.xlu0 %1083 }
 0x154   : > { %v2657_v3 = vmul.f32 %v1358_v51, %v2569_v56  ;;  %v1343_v17 = vadd.f32 0.0001, %v1335_v58  ;;  %v1359_v46 = vadd.f32 0.0009, %v1351_v42  ;;  %v1010_v61 = vrot.slane %v944_v31, 2  ;;  %v3080_v42 = vld [vmem:[#allocation17_spill] sm:$0xff] }
 0x155   : > { %v816_v35 = vmul.f32 %v2521_v59, %v2521_v59  ;;  %v1036_v44 = vmul.f32 0.11111111, %v1028_v18  ;;  %v976_v56 = vsel %vm317_vm0, %v974_v6, %v975_v2  ;;  %v978_v12 = vsel %vm317_vm0, %v975_v2, %v977_v9  ;;  %v3078_v9 = vld [vmem:[#allocation8_spill] sm:$0xff]  ;;  %v3082_v18 = vld [vmem:[#allocation5_spill] sm:$0xff] }
 0x156   : > { %v2667_v33 = vmul.f32 %v1359_v46, %v1343_v17  ;;  %v993_v50 = vadd.f32 %v976_v56, %v944_v31  ;;  %v994_v30 = vadd.f32 %v978_v12, %v945_v15  ;;  %v1012_v20 = vsel %vm354_vm1, %v1010_v61, %v1011_v37  ;;  %v3084_v46 = vld [vmem:[#allocation7_spill] sm:$0xff]  ;;  %v3086_v12 = vld [vmem:[#allocation22_spill] sm:$0xff] }
 0x157   : > { %v824_v48 = vsub.f32 %v808_v45, %v816_v35  ;;  %v1336_v40 = vadd.f32 %v2547_v16, %v816_v35  ;;  %v1052_v57 = vsub.f32 %v1036_v44, %v2547_v16  ;;  %v1014_v5 = vsel %vm354_vm1, %v1011_v37, %v1013_v19  ;;  %v2673_v0 = vpop.permute.xlu1 %1089  ;;  %v2675_v7 = vpop.permute.xlu0 %1087  ;;  %v3083_v37 = vld [vmem:[#allocation15_spill] sm:$0xff]  ;;  %v3085_v35 = vld [vmem:[#allocation16_spill] sm:$0xff] }
 0x158   : > { %v1029_v53 = vadd.f32 %v1012_v20, %v993_v50  ;;  %v1030_v8 = vadd.f32 %v1014_v5, %v994_v30  ;;  %v3075_v23 = vsub.f32 %v2588_v43, %v2286_v10  ;;  %v3076_v29 = vsub.f32 %v2590_v34, %v2288_v22  ;;  %v3079_v10 = vld [vmem:[#allocation6_spill] sm:$0xff]  ;;  %v3081_v22 = vld [vmem:[#allocation21_spill] sm:$0xff] }
 0x159   : > { %v1352_v54 = vadd.f32 %v1052_v57, %v824_v48  ;;  %v1344_v31 = vadd.f32 0.0001, %v1336_v40  ;;  %v1283_v55 = vmul.f32 2.0, %v2453_v49  ;;  %v1345_v27 = vadd.f32 0.0001, %v2302_v47  ;;  %v3087_v40 = vld [vmem:[#allocation40_spill] sm:$0xff] }
 0x15a   : > { %v1037_v13 = vmul.f32 0.11111111, %v1029_v53  ;;  %v1038_v11 = vmul.f32 0.11111111, %v1030_v8  ;;  %v1284_v15 = vmul.f32 2.0, %v3078_v9  ;;  %v1285_v43 = vmul.f32 2.0, %v3079_v10 }
 0x15b   : > { %v1360_v62 = vadd.f32 0.0009, %v1352_v54  ;;  %v2677_v1 = vpop.permute.xlu1 %1093  ;;  %v2679_v21 = vpop.permute.xlu0 %1091  ;;  %v1286_v6 = vmul.f32 2.0, %v3080_v42  ;;  %v1287_v34 = vmul.f32 2.0, %v3081_v22  ;;  %v1291_v19 = vmul.f32 %v1283_v55, %v3082_v18  ;;  %v3091_v55 = vld [vmem:[#allocation43_spill] sm:$0xff] }
 0x15c   : > { %v1053_v36 = vsub.f32 %v1037_v13, %v2290_v52  ;;  %v1054_v16 = vsub.f32 %v1038_v11, %v2292_v32  ;;  %v3077_v52 = vld [vmem:[#allocation55_spill] sm:$0xff]  ;;  %v1292_v17 = vmul.f32 %v1284_v15, %v3083_v37  ;;  %v1293_v61 = vmul.f32 %v1285_v43, %v3084_v46  ;;  %v3088_v13 = vld [vmem:[#allocation41_spill] sm:$0xff]  ;;  %v3093_v43 = vld [vmem:[#allocation46_spill] sm:$0xff] }
 0x15d   : > { %v2683_v24 = vmul.f32 %v1360_v62, %v1344_v31  ;;  %v1346_v32 = vadd.f32 0.0001, %v3077_v52  ;;  %v1294_v44 = vmul.f32 %v1286_v6, %v3085_v35  ;;  %v1295_v50 = vmul.f32 %v1287_v34, %v3086_v12 }
 0x15e   : > { %v1353_v58 = vadd.f32 %v1053_v36, %v3075_v23  ;;  %v1354_v39 = vadd.f32 %v1054_v16, %v3076_v29  ;;  %v1288_v20 = vmul.f32 2.0, %v2521_v59  ;;  %v2714_v48 = vadd.f32 0.0001, %v1291_v19  ;;  %v3089_v36 = vld [vmem:[#allocation9_spill] sm:$0xff]  ;;  %v3090_v29 = vld [vmem:[#allocation42_spill] sm:$0xff] }
 0x15f   : > { %v2693_v51 = vpop.permute.xlu1 %1097  ;;  %v2695_v4 = vpop.permute.xlu0 %1095  ;;  %v1116_v57 = vadd.f32 %v2646_v38, %v3087_v40  ;;  %v2720_v5 = vmul.f32 %v3082_v18, %v2453_v49  ;;  %v2722_v53 = vadd.f32 0.0001, %v1292_v17  ;;  %v2724_v8 = vadd.f32 0.0001, %v1293_v61  ;;  %v3095_v18 = vld [vmem:[#allocation48_spill] sm:$0xff] }
 0x160   : > { %v1361_v45 = vadd.f32 0.0009, %v1353_v58  ;;  %v1362_v41 = vadd.f32 0.0009, %v1354_v39  ;;  %v2726_v54 = vadd.f32 0.0001, %v1294_v44  ;;  %v1115_v11 = vadd.f32 %v2648_v28, %v3088_v13 }
 0x161   : > { %v2730_v62 = vadd.f32 0.0001, %v1295_v50  ;;  %v2733_v16 = vmul.f32 %v1288_v20, %v3089_v36  ;;  %1578 = vrcp.f32 %v2626_v25  ;;  %v2739_v58 = vmul.f32 %v3083_v37, %v3078_v9 }
 0x162   : > { %v1369_v2 = vmul.f32 %v1361_v45, %v1345_v27  ;;  %v2703_v47 = vmul.f32 %v1362_v41, %v1346_v32  ;;  %1580 = vrcp.f32 %v2632_v60  ;;  %v2743_v28 = vmul.f32 %v3084_v46, %v3079_v10  ;;  %v3096_v46 = vld [vmem:[#allocation49_spill] sm:$0xff] }
 0x163   : > { %v2708_v56 = vpop.permute.xlu1 %1101  ;;  %1582 = vrcp.f32 %v2654_v63  ;;  %v1118_v39 = vadd.f32 %v2659_v26, %v3090_v29  ;;  %v1117_v25 = vadd.f32 %v2661_v14, %v3091_v55  ;;  %v2754_v9 = vmul.f32 %v3085_v35, %v3080_v42  ;;  %v3094_v42 = vld [vmem:[#allocation47_spill] sm:$0xff]  ;;  %v3097_v35 = vld [vmem:[#allocation50_spill] sm:$0xff] }
 0x164   : > { %v2711_v30 = vpop.permute.xlu0 %1099  ;;  %1584 = vrcp.f32 %v2657_v3  ;;  %v2758_v63 = vmul.f32 %v3086_v12, %v3081_v22  ;;  %v2762_v26 = vmul.f32 %v3089_v36, %v2521_v59  ;;  %v3092_v3 = vld [vmem:[#allocation45_spill] sm:$0xff]  ;;  %v1119_v6 = vadd.f32 %v2675_v7, %v3093_v43 }
 0x165   : > { %1586 = vrcp.f32 %v2667_v33  ;;  %v1120_v14 = vadd.f32 %v2673_v0, %v3092_v3  ;;  %v1122_v34 = vadd.f32 %v2677_v1, %v3094_v42  ;;  %v1121_v22 = vadd.f32 %v2679_v21, %v3095_v18 }
 0x166   : > { %1588 = vrcp.f32 %v2683_v24  ;;  %v1124_v61 = vadd.f32 %v2693_v51, %v3096_v46  ;;  %v1123_v7 = vadd.f32 %v2695_v4, %v3097_v35 }
 0x167   : > { %v1130_v31 = vpop.permute.xlu1 %1129  ;;  %1590 = vrcp.f32 %v1369_v2  ;;  %v3098_v2 = vld [vmem:[#allocation51_spill] sm:$0xff] }
 0x168   : > { %v1164_v38 = vadd.f32 %v1130_v31, %v1116_v57  ;;  %v1128_v49 = vpop.permute.xlu0 %1127  ;;  %1592 = vrcp.f32 %v2703_v47 }
 0x169   : > { %v1163_v23 = vadd.f32 %v1128_v49, %v1115_v11 }
 0x16a   : > { %v1188_v27 = vrot.slane %v1164_v38, 1  ;;  %v1224_v60 = vrot.slane %v1164_v38, 2 }
 0x16b   : > { %v1187_v52 = vrot.slane %v1163_v23, 1  ;;  %v1223_v32 = vrot.slane %v1163_v23, 2  ;;  %v1134_v45 = vpop.permute.xlu1 %1133  ;;  %v1579_v24 = vpop.eup %1578 }
 0x16c   : > { %v1132_v41 = vpop.permute.xlu0 %1131  ;;  %v1166_v10 = vadd.f32 %v1134_v45, %v1118_v39  ;;  %v2780_v31 = vpop.eup %1580  ;;  %v1126_v39 = vadd.f32 %v2708_v56, %v3098_v2 }
 0x16d   : > { %v1189_v15 = vsel %vm317_vm0, %v1187_v52, %v1188_v27  ;;  %v1165_v33 = vadd.f32 %v1132_v41, %v1117_v25  ;;  %v1225_v59 = vsel %vm354_vm1, %v1223_v32, %v1224_v60  ;;  %v2783_v29 = vpop.eup %1582  ;;  %v3099_v32 = vld [vmem:[#allocation52_spill] sm:$0xff] }
 0x16e   : > { %v1215_v19 = vadd.f32 %v1189_v15, %v1163_v23  ;;  %v1192_v50 = vrot.slane %v1166_v10, 1  ;;  %v1228_v57 = vrot.slane %v1166_v10, 2  ;;  %v1125_v45 = vadd.f32 %v2711_v30, %v3099_v32 }
 0x16f   : > { %v1190_v37 = vrot.slane %v1165_v33, 1  ;;  %v1226_v0 = vrot.slane %v1165_v33, 2  ;;  %v1138_v17 = vpop.permute.xlu1 %1137 }
 0x170   : > { %v1251_v44 = vadd.f32 %v1225_v59, %v1215_v19  ;;  %v1168_v12 = vadd.f32 %v1138_v17, %v1120_v14  ;;  %v1136_v1 = vpop.permute.xlu0 %1135 }
 0x171   : > { %v1191_v21 = vsel %vm317_vm0, %v1188_v27, %v1190_v37  ;;  %v1167_v20 = vadd.f32 %v1136_v1, %v1119_v6  ;;  %v1227_v51 = vsel %vm354_vm1, %v1224_v60, %v1226_v0 }
 0x172   : > { %v1259_v40 = vmul.f32 0.11111111, %v1251_v44  ;;  %v1216_v13 = vadd.f32 %v1191_v21, %v1164_v38  ;;  %v1195_v11 = vrot.slane %v1168_v12, 1  ;;  %v1231_v36 = vrot.slane %v1168_v12, 2  ;;  %v2788_v38 = vpop.eup %1584 }
 0x173   : > { %v1193_v49 = vrot.slane %v1167_v20, 1  ;;  %v1229_v4 = vrot.slane %v1167_v20, 2  ;;  %v1142_v23 = vpop.permute.xlu1 %1141  ;;  %v2795_v14 = vpop.eup %1586 }
 0x174   : > { %v1275_v55 = vsub.f32 %v1259_v40, %v2720_v5  ;;  %v1252_v25 = vadd.f32 %v1227_v51, %v1216_v13  ;;  %v1170_v27 = vadd.f32 %v1142_v23, %v1122_v34  ;;  %v1140_v52 = vpop.permute.xlu0 %1139  ;;  %v2799_v17 = vpop.eup %1588 }
 0x175   : > { %v1194_v60 = vsel %vm317_vm0, %v1192_v50, %v1193_v49  ;;  %v1196_v41 = vsel %vm317_vm0, %v1193_v49, %v1195_v11  ;;  %v1230_v3 = vsel %vm354_vm1, %v1228_v57, %v1229_v4  ;;  %v1232_v43 = vsel %vm354_vm1, %v1229_v4, %v1231_v36  ;;  %v2804_v21 = vpop.eup %1590 }
 0x176   : > { %v1307_v15 = vmul.f32 2.0, %v1275_v55  ;;  %v1260_v56 = vmul.f32 0.11111111, %v1252_v25  ;;  %v1217_v33 = vadd.f32 %v1194_v60, %v1166_v10  ;;  %v1218_v5 = vadd.f32 %v1196_v41, %v1167_v20 }
 0x177   : > { %v1198_v6 = vrot.slane %v1170_v27, 1  ;;  %v1234_v42 = vrot.slane %v1170_v27, 2  ;;  %v1169_v34 = vadd.f32 %v1140_v52, %v1121_v22  ;;  %v1146_v18 = vpop.permute.xlu1 %1145 }
 0x178   : > { %v1315_v19 = vadd.f32 0.0009, %v1307_v15  ;;  %v1276_v30 = vsub.f32 %v1260_v56, %v2739_v58  ;;  %v1253_v59 = vadd.f32 %v1230_v3, %v1217_v33  ;;  %v1254_v37 = vadd.f32 %v1232_v43, %v1218_v5  ;;  %v1144_v0 = vpop.permute.xlu0 %1143 }
 0x179   : > { %v1197_v46 = vrot.slane %v1169_v34, 1  ;;  %v1233_v35 = vrot.slane %v1169_v34, 2  ;;  %v2801_v44 = vadd.f32 %v1146_v18, %v1124_v61  ;;  %v1171_v10 = vadd.f32 %v1144_v0, %v1123_v7 }
 0x17a   : > { %v1323_v12 = vmul.f32 %v1315_v19, %v2714_v48  ;;  %v1308_v1 = vmul.f32 2.0, %v1276_v30  ;;  %v1261_v50 = vmul.f32 0.11111111, %v1253_v59  ;;  %v1262_v22 = vmul.f32 0.11111111, %v1254_v37 }
 0x17b   : > { %v1199_v58 = vsel %vm317_vm0, %v1197_v46, %v1198_v6  ;;  %v1235_v20 = vsel %vm354_vm1, %v1233_v35, %v1234_v42  ;;  %v1202_v40 = vrot.slane %v2801_v44, 1  ;;  %v1238_v57 = vrot.slane %v2801_v44, 2  ;;  %v1150_v61 = vpop.permute.xlu1 %1149 }
 0x17c   : > { %v1379_v13 = vmul.f32 %v1579_v24, %v1323_v12  ;;  %v1316_v7 = vadd.f32 0.0009, %v1308_v1  ;;  %v1277_v11 = vsub.f32 %v1261_v50, %v2743_v28  ;;  %v1278_v48 = vsub.f32 %v1262_v22, %v2754_v9  ;;  %v1148_v52 = vpop.permute.xlu0 %1147 }
 0x17d   : > { %v1219_v51 = vadd.f32 %v1199_v58, %v1169_v34  ;;  %v1200_v36 = vrot.slane %v1171_v10, 1  ;;  %v1236_v49 = vrot.slane %v1171_v10, 2  ;;  %v1174_v4 = vadd.f32 %v1150_v61, %v1126_v39 }
 0x17e   : > { %v1387_v23 = vsub.f32 1.0, %v1379_v13  ;;  %v1324_v2 = vmul.f32 %v1316_v7, %v2722_v53  ;;  %v1309_v55 = vmul.f32 2.0, %v1277_v11  ;;  %v1310_v25 = vmul.f32 2.0, %v1278_v48 }
 0x17f   : > { %v1255_v32 = vadd.f32 %v1235_v20, %v1219_v51  ;;  %v1201_v24 = vsel %vm317_vm0, %v1198_v6, %v1200_v36  ;;  %v1237_v60 = vsel %vm354_vm1, %v1234_v42, %v1236_v49  ;;  %v1205_v28 = vrot.slane %v1174_v4, 1 }
 0x180   : > { %v1395_v9 = vmul.f32 0.5, %v1387_v23  ;;  %v1380_v41 = vmul.f32 %v2780_v31, %v1324_v2  ;;  %v1317_v3 = vadd.f32 0.0009, %v1309_v55  ;;  %v1318_v15 = vadd.f32 0.0009, %v1310_v25  ;;  %v3100_v2 = vld [vmem:[#allocation56_spill] sm:$0xff] }
 0x181   : > { %v1263_v39 = vmul.f32 0.11111111, %v1255_v32  ;;  %v1220_v56 = vadd.f32 %v1201_v24, %v1170_v27  ;;  %v1241_v33 = vrot.slane %v1174_v4, 2  ;;  %v1173_v53 = vadd.f32 %v1148_v52, %v1125_v45  ;;  %v3101_v25 = vld [vmem:[#allocation57_spill] sm:$0xff] }
 0x182   : > { %v1403_v5 = vmax.f32 %v1395_v9, 0.0  ;;  %v1388_v43 = vsub.f32 1.0, %v1380_v41  ;;  %v1325_v34 = vmul.f32 %v1317_v3, %v2724_v8  ;;  %v1326_v6 = vmul.f32 %v1318_v15, %v2726_v54  ;;  %v3102_v24 = vld [vmem:[#allocation53_spill] sm:$0xff] }
 0x183   : > { %v1279_v42 = vsub.f32 %v1263_v39, %v2758_v63  ;;  %v1256_v18 = vadd.f32 %v1237_v60, %v1220_v56  ;;  %v1203_v19 = vrot.slane %v1173_v53, 1  ;;  %v1239_v30 = vrot.slane %v1173_v53, 2 }
 0x184   : > { %v1411_v59 = vmin.f32 %v1403_v5, 1.0  ;;  %v1396_v37 = vmul.f32 0.5, %v1388_v43  ;;  %v1381_v31 = vmul.f32 %v2783_v29, %v1325_v34  ;;  %v1382_v0 = vmul.f32 %v2788_v38, %v1326_v6  ;;  %v1593_v43 = vpop.eup %1592 }
 0x185   : > { %v1311_v27 = vmul.f32 2.0, %v1279_v42  ;;  %v1264_v46 = vmul.f32 0.11111111, %v1256_v18  ;;  %v1204_v45 = vsel %vm317_vm0, %v1202_v40, %v1203_v19  ;;  %v1206_v35 = vsel %vm317_vm0, %v1203_v19, %v1205_v28  ;;  %v3103_v28 = vld [vmem:[#allocation54_spill] sm:$0xff] }
 0x186   : > { %1420 = vst.msk [vmem:[%s2826_s5] sm:$0xff] %vm1419_vm2, %v1411_v59  ;;  %v1404_v8 = vmax.f32 %v1396_v37, 0.0  ;;  %v1389_v54 = vsub.f32 1.0, %v1381_v31  ;;  %v1390_v63 = vsub.f32 1.0, %v1382_v0  ;;  %v1221_v10 = vadd.f32 %v1204_v45, %v2801_v44 }
 0x187   : > { %v1319_v29 = vadd.f32 0.0009, %v1311_v27  ;;  %v1280_v38 = vsub.f32 %v1264_v46, %v2762_v26  ;;  %v1222_v12 = vadd.f32 %v1206_v35, %v1173_v53  ;;  %v1240_v1 = vsel %vm354_vm1, %v1238_v57, %v1239_v30 }
 0x188   : > { %v1412_v50 = vmin.f32 %v1404_v8, 1.0  ;;  %v1397_v22 = vmul.f32 0.5, %v1389_v54  ;;  %v1398_v58 = vmul.f32 0.5, %v1390_v63  ;;  %v1242_v20 = vsel %vm354_vm1, %v1239_v30, %v1241_v33 }
 0x189   : > { %v1327_v40 = vmul.f32 %v1319_v29, %v2730_v62  ;;  %v1312_v61 = vmul.f32 2.0, %v1280_v38  ;;  %v1257_v13 = vadd.f32 %v1240_v1, %v1221_v10  ;;  %v1258_v7 = vadd.f32 %v1242_v20, %v1222_v12 }
 0x18a   : > { %v1304_v11 = vadd.f32 0.0001, %v2733_v16  ;;  %1421 = vst.msk [vmem:[%s2826_s5 + $0x8] sm:$0xff] %vm1419_vm2, %v1412_v50  ;;  %v1405_v26 = vmax.f32 %v1397_v22, 0.0  ;;  %v1406_v44 = vmax.f32 %v1398_v58, 0.0 }
 0x18b   : > { %v1383_v57 = vmul.f32 %v2795_v14, %v1327_v40  ;;  %v1320_v48 = vadd.f32 0.0009, %v1312_v61  ;;  %v1265_v51 = vmul.f32 0.11111111, %v1257_v13  ;;  %v1266_v36 = vmul.f32 0.11111111, %v1258_v7 }
 0x18c   : > { %v1413_v49 = vmin.f32 %v1405_v26, 1.0  ;;  %v1414_v62 = vmin.f32 %v1406_v44, 1.0  ;;  %v1305_v60 = vadd.f32 0.0001, %v3102_v24  ;;  %v1306_v9 = vadd.f32 0.0001, %v3103_v28 }
 0x18d   : > { %v1391_v4 = vsub.f32 1.0, %v1383_v57  ;;  %v1328_v23 = vmul.f32 %v1320_v48, %v1304_v11  ;;  %v1281_v55 = vsub.f32 %v1265_v51, %v3100_v2  ;;  %v1282_v16 = vsub.f32 %v1266_v36, %v3101_v25 }
 0x18e   : > { %1422 = vst.msk [vmem:[%s2826_s5 + $0x10] sm:$0xff] %vm1419_vm2, %v1413_v49  ;;  %1423 = vst.msk [vmem:[%s2826_s5 + $0x18] sm:$0xff] %vm1419_vm2, %v1414_v62 }
 0x18f   : > { %v1399_v47 = vmul.f32 0.5, %v1391_v4  ;;  %v1384_v52 = vmul.f32 %v2799_v17, %v1328_v23  ;;  %v1313_v14 = vmul.f32 2.0, %v1281_v55  ;;  %v1314_v32 = vmul.f32 2.0, %v1282_v16 }
 0x191   : > { %v1407_v41 = vmax.f32 %v1399_v47, 0.0  ;;  %v1392_v3 = vsub.f32 1.0, %v1384_v52  ;;  %v1321_v15 = vadd.f32 0.0009, %v1313_v14  ;;  %v1322_v39 = vadd.f32 0.0009, %v1314_v32 }
 0x193   : > { %v1415_v56 = vmin.f32 %v1407_v41, 1.0  ;;  %v1400_v33 = vmul.f32 0.5, %v1392_v3  ;;  %v1329_v53 = vmul.f32 %v1321_v15, %v1305_v60  ;;  %v1330_v5 = vmul.f32 %v1322_v39, %v1306_v9 }
 0x195   : > { %1424 = vst.msk [vmem:[%s2826_s5 + $0x20] sm:$0xff] %vm1419_vm2, %v1415_v56  ;;  %v1408_v17 = vmax.f32 %v1400_v33, 0.0  ;;  %v1385_v34 = vmul.f32 %v2804_v21, %v1329_v53  ;;  %v1386_v6 = vmul.f32 %v1593_v43, %v1330_v5 }
 0x197   : > { %v1416_v42 = vmin.f32 %v1408_v17, 1.0  ;;  %v1393_v18 = vsub.f32 1.0, %v1385_v34  ;;  %v1394_v19 = vsub.f32 1.0, %v1386_v6 }
 0x199   : > { %1425 = vst.msk [vmem:[%s2826_s5 + $0x28] sm:$0xff] %vm1419_vm2, %v1416_v42  ;;  %v1401_v30 = vmul.f32 0.5, %v1393_v18  ;;  %v1402_v59 = vmul.f32 0.5, %v1394_v19 }
 0x19b   : > { %v1409_v37 = vmax.f32 %v1401_v30, 0.0  ;;  %v1410_v31 = vmax.f32 %v1402_v59, 0.0 }
 0x19d   : > { %v1417_v21 = vmin.f32 %v1409_v37, 1.0  ;;  %v1418_v0 = vmin.f32 %v1410_v31, 1.0 }
 0x19f   : > { %1426 = vst.msk [vmem:[%s2826_s5 + $0x30] sm:$0xff] %vm1419_vm2, %v1417_v21  ;;  %1427 = vst.msk [vmem:[%s2826_s5 + $0x38] sm:$0xff] %vm1419_vm2, %v1418_v0 }
 0x1a0   : > { %1607 = shalt.err (!%p1604_p3)
}
 0x1a1   : > { %s1608_s24 = scalar_lea.hbm %s2859_s16, 1024  ;;  %s1612_s27 = scalar_lea.hbm %s2912_s2, 2048 }
 0x1a2   : > { %p1609_p4 = scmp.ne.s32.totalorder %s2859_s16, %s1608_s24  ;;  %p1613_p9 = scmp.lt.u32.totalorder %s2859_s16, %s2912_s2 }
 0x1a3   : > { %p1614_p10 = scmp.lt.u32.totalorder %s1612_s27, %s1608_s24  ;;  %p1616_p12 = scmp.lt.u32.totalorder %s1608_s24, %s2859_s16 }
 0x1a4   : > { %p1610_p7 = pnand %p1609_p4, %p1716_p5 }
 0x1a5   : > { %p1615_p11 = por %p1614_p10, %p1613_p9 }
 0x1a6   : > { %p1611_p8 = pneg %p1610_p7 }
 0x1a7   : > { %p1617_p13 = por %p1616_p12, %p1615_p11 }
 0x1a9   : > { %p1618_p0 = pnand %p1617_p13, %p1611_p8 }
 0x1ab   : > { %1621 = shalt.err (!%p1618_p0)
}
 0x1ac   : > { %s1661_s30 = smov 128   ;;  %s1662_s3 = smov 8  }
 0x1ad   : > { %1535 = dma.vmem_to_hbm [thread:$0]  (%p1716_p5), %s2861_s7, 1024, %s2859_s16, %s2869_s13, %s1661_s30, %s1661_s30, %s1662_s3  }
 0x1ae PF: > { %p1541_p1 = scmp.ge.s32.totalorder %s1656_s12, 2  ;;  %s1458_s4 = sand.u32 1, %s1644_s9  }
 0x1af   : > { %s1459_s5 = scalar_lea.sflag [#allocation3], %s1458_s4 }
 0x1b0   : > { %p1538_p2 = pnand %p1541_p1, %p1720_p6 }
 0x1b2   : > { %1639 = dma.done.wait (!%p1538_p2), %s1459_s5, 1024  }
 0x1b3   : > { %1641 = vsyncadd (!%p1538_p2), %s1459_s5, 4294966272  ;;  %p12_p3 = scmp.ge.s32.totalorder %s1703_s15, 4   ;;  %s3104_s9 = smov %s1648_s10 }
 0x1b4   : > { %s3105_s10 = smov %s1652_s11  ;;  %s3106_s11 = smov %s1714_s18 }
 0x1b5   : > { %s3107_s12 = smov %s1703_s15  ;;  %14 = sbr.rel (!%p12_p3) target bundleno = 3 (0x3), region = 66 }
 0x1bc   :  { %1464 = vsyncpa [#allocation3], 1 }
 0x1bd   :  { %1466 = vsyncpa [#allocation3 + $0x1], 1 }

</bundles_post_ra>
